<compile_context>
chip_gen: v7x
topology: tpu7x:2x2x1
jax: 0.10.0
libtpu: 0.0.40
codegen_flags: <defaults>
</compile_context>

<pallas_src>
import numpy as np
import jax
import jax.numpy as jnp
from jax.experimental import pallas as pl
from jax.experimental.pallas import tpu as pltpu

F32 = jnp.float32
BF16 = jnp.bfloat16


# ---------------------------------------------------------------------------
# Fully fused per-image kernel
# ---------------------------------------------------------------------------

def _fused_net_kernel(x_ref, w1m_ref, ra1_ref, cb1_ref, b1_ref,
                      w2m_ref, ra2_ref, cb2_ref, b2_ref,
                      wf1_ref, bf1_ref, wf2_ref, bf2_ref,
                      out_ref, z1_ref, z2_ref):
    """Whole Net.forward (eval mode) for one image, entirely in VMEM.

    Activation layouts:
      y1[h, w*10+o]  (24, 240) : conv1 pre-bias output
      z1[p, q*10+o]  (12, 120) : relu(maxpool2(conv1) + b1)
      y2[h, w*20+o]  ( 8, 160) : conv2 pre-bias output
      z2[p, q*20+o]  ( 4,  80) : relu(maxpool2(conv2) + b2)
    """
    # ---- conv1: 5x5, 1 -> 10, via 5 banded MXU matmuls --------------------
    def c1_term(dy):
        return jnp.dot(x_ref[0, dy:dy + 24, :].astype(BF16), w1m_ref[dy],
                       preferred_element_type=F32)

    y1 = c1_term(0)
    for dy in range(1, 5):
        y1 = y1 + c1_term(dy)                                   # (24, 240) f32

    # ---- max_pool2d(2) + bias + ReLU  ->  z1 (12, 120) ---------------------
    cands = []
    for a in range(2):
        rows = jnp.dot(ra1_ref[a], y1, preferred_element_type=F32)   # (12, 240)
        for b in range(2):
            cands.append(jnp.dot(rows, cb1_ref[b],
                                 preferred_element_type=F32))        # (12, 120)
    pooled1 = jnp.maximum(jnp.maximum(cands[0], cands[1]),
                          jnp.maximum(cands[2], cands[3]))
    z1_ref[...] = jnp.maximum(pooled1 + b1_ref[...], 0.0)

    # ---- conv2: 5x5, 10 -> 20 (Dropout2d = identity in eval mode) ----------
    def c2_term(dy):
        return jnp.dot(z1_ref[dy:dy + 8, :].astype(BF16), w2m_ref[dy],
                       preferred_element_type=F32)

    y2 = c2_term(0)
    for dy in range(1, 5):
        y2 = y2 + c2_term(dy)                                   # (8, 160) f32

    # ---- max_pool2d(2) + bias + ReLU  ->  z2 (4, 80) -----------------------
    cands2 = []
    for a in range(2):
        rows = jnp.dot(ra2_ref[a], y2, preferred_element_type=F32)   # (4, 160)
        for b in range(2):
            cands2.append(jnp.dot(rows, cb2_ref[b],
                                  preferred_element_type=F32))       # (4, 80)
    pooled2 = jnp.maximum(jnp.maximum(cands2[0], cands2[1]),
                          jnp.maximum(cands2[2], cands2[3]))
    z2_ref[...] = jnp.maximum(pooled2 + b2_ref[...], 0.0)

    # ---- fc1 + ReLU (NCHW flatten folded into wf1 row permutation) ---------
    h = jnp.dot(z2_ref[0:1, :].astype(BF16), wf1_ref[0],
                preferred_element_type=F32)
    for p in range(1, 4):
        h = h + jnp.dot(z2_ref[p:p + 1, :].astype(BF16), wf1_ref[p],
                        preferred_element_type=F32)
    h = jnp.maximum(h + bf1_ref[...], 0.0)                      # (1, 50)
    # F.dropout(training=False) -> identity.

    # ---- fc2 + log_softmax --------------------------------------------------
    logits = jnp.dot(h.astype(BF16), wf2_ref[...],
                     preferred_element_type=F32) + bf2_ref[...]  # (1, 10)
    mx = jnp.max(logits, axis=-1, keepdims=True)
    s = logits - mx
    lse = jnp.log(jnp.sum(jnp.exp(s), axis=-1, keepdims=True))
    out_ref[0] = s - lse


# ---------------------------------------------------------------------------
# Wrapper: single fused pallas_call, grid over the batch
# ---------------------------------------------------------------------------

def net_forward(x_nchw, consts):
    """x: (B, 1, 28, 28) f32  ->  (B, 10) log-probabilities."""
    B = x_nchw.shape[0]
    x = x_nchw.reshape(B, 28, 28).astype(F32)

    macs_per_image = (5 * 24 * 28 * 240                              # conv1
                      + 2 * 12 * 24 * 240 + 4 * 12 * 240 * 120        # pool1
                      + 5 * 8 * 120 * 160                            # conv2
                      + 2 * 4 * 8 * 160 + 4 * 4 * 160 * 80            # pool2
                      + 4 * 80 * 50 + 50 * 10)                        # fc1, fc2
    const_bytes = sum(int(np.prod(v.shape)) * v.dtype.itemsize
                      for v in consts.values())
    cost = pl.CostEstimate(
        flops=2 * macs_per_image * B,
        transcendentals=16 * B,
        bytes_accessed=const_bytes + x.size * x.dtype.itemsize + B * 10 * 4)

    def full(shape):
        return pl.BlockSpec(shape, lambda n: (0,) * len(shape))

    out = pl.pallas_call(
        _fused_net_kernel,
        out_shape=jax.ShapeDtypeStruct((B, 1, 10), F32),
        grid=(B,),
        in_specs=[
            pl.BlockSpec((1, 28, 28), lambda n: (n, 0, 0)),  # image n
            full((5, 28, 240)),     # conv1 banded weights (bf16)
            full((2, 12, 24)),      # pool1 row selectors (f32, 0/1)
            full((2, 240, 120)),    # pool1 column selectors (f32, 0/1)
            full((1, 120)),         # conv1 bias, tiled over w
            full((5, 120, 160)),    # conv2 banded weights (bf16)
            full((2, 4, 8)),        # pool2 row selectors
            full((2, 160, 80)),     # pool2 column selectors
            full((1, 80)),          # conv2 bias, tiled over w
            full((4, 80, 50)),      # fc1 weights, flatten-permuted (bf16)
            full((1, 50)),          # fc1 bias
            full((50, 10)),         # fc2 weights (bf16)
            full((1, 10)),          # fc2 bias
        ],
        out_specs=pl.BlockSpec((1, 1, 10), lambda n: (n, 0, 0)),
        scratch_shapes=[pltpu.VMEM((12, 120), F32),   # z1
                        pltpu.VMEM((4, 80), F32)],    # z2
        compiler_params=pltpu.CompilerParams(
            dimension_semantics=("parallel",),
            vmem_limit_bytes=32 * 1024 * 1024),
        cost_estimate=cost,
    )(x, consts["w1m"], consts["ra1"], consts["cb1"], consts["b1t"],
      consts["w2m"], consts["ra2"], consts["cb2"], consts["b2t"],
      consts["wf1p"], consts["bf1"], consts["wf2"], consts["bf2"])
    return out.reshape(B, 10)


net_forward_jit = jax.jit(net_forward)


# ---------------------------------------------------------------------------
# Host-side: parameter init (PyTorch layout) + constant-operand construction
# ---------------------------------------------------------------------------

def _uniform(key, shape, bound):
    return jax.random.uniform(key, shape, F32, minval=-bound, maxval=bound)


def init_torch_params(key):
    """PyTorch-default-style uniform(+-1/sqrt(fan_in)) params in PyTorch layouts."""
    ks = jax.random.split(key, 8)
    return dict(
        w1=_uniform(ks[0], (10, 1, 5, 5), 1.0 / 25 ** 0.5),    # OIHW
        b1=_uniform(ks[1], (10,), 1.0 / 25 ** 0.5),
        w2=_uniform(ks[2], (20, 10, 5, 5), 1.0 / 250 ** 0.5),
        b2=_uniform(ks[3], (20,), 1.0 / 250 ** 0.5),
        wf1=_uniform(ks[4], (50, 320), 1.0 / 320 ** 0.5),       # (out, in)
        bf1=_uniform(ks[5], (50,), 1.0 / 320 ** 0.5),
        wf2=_uniform(ks[6], (10, 50), 1.0 / 50 ** 0.5),
        bf2=_uniform(ks[7], (10,), 1.0 / 50 ** 0.5),
    )


def build_kernel_consts(p):
    """Precompute banded conv matrices, pooling selectors and permuted fc weights."""
    w1 = np.asarray(p["w1"], np.float32)    # (10, 1, 5, 5)
    b1 = np.asarray(p["b1"], np.float32)
    w2 = np.asarray(p["w2"], np.float32)    # (20, 10, 5, 5)
    b2 = np.asarray(p["b2"], np.float32)
    wf1 = np.asarray(p["wf1"], np.float32)  # (50, 320)
    bf1 = np.asarray(p["bf1"], np.float32)
    wf2 = np.asarray(p["wf2"], np.float32)  # (10, 50)
    bf2 = np.asarray(p["bf2"], np.float32)

    # conv1 banded: y1[h, w*10+o] = sum_dy x[h+dy, :] @ W1m[dy]
    W1m = np.zeros((5, 28, 24 * 10), np.float32)
    for dy in range(5):
        for dx in range(5):
            for w in range(24):
                W1m[dy, w + dx, w * 10:(w + 1) * 10] = w1[:, 0, dy, dx]

    # conv2 banded: y2[h, w*20+o] = sum_dy z1[h+dy, :] @ W2m[dy]
    W2m = np.zeros((5, 120, 8 * 20), np.float32)
    for dy in range(5):
        for dx in range(5):
            for w in range(8):
                W2m[dy, (w + dx) * 10:(w + dx) * 10 + 10,
                    w * 20:(w + 1) * 20] = w2[:, :, dy, dx].T   # [c, o]

    # 2x2/stride-2 max-pool selectors (0/1 matrices).
    Ra1 = np.zeros((2, 12, 24), np.float32)
    Cb1 = np.zeros((2, 240, 120), np.float32)
    Ra2 = np.zeros((2, 4, 8), np.float32)
    Cb2 = np.zeros((2, 160, 80), np.float32)
    for a in range(2):
        for pp in range(12):
            Ra1[a, pp, 2 * pp + a] = 1.0
        for q in range(12):
            for o in range(10):
                Cb1[a, (2 * q + a) * 10 + o, q * 10 + o] = 1.0
        for pp in range(4):
            Ra2[a, pp, 2 * pp + a] = 1.0
        for q in range(4):
            for o in range(20):
                Cb2[a, (2 * q + a) * 20 + o, q * 20 + o] = 1.0

    # fc1 with the PyTorch NCHW flatten (o*16 + p*4 + q) folded in:
    #   Wf1p[p, q*20+o, j] = wf1[j, o*16 + p*4 + q]
    wf1_t = wf1.T                                    # (320, 50)
    Wf1p = np.zeros((4, 80, 50), np.float32)
    for pp in range(4):
        for q in range(4):
            for o in range(20):
                Wf1p[pp, q * 20 + o, :] = wf1_t[o * 16 + pp * 4 + q, :]

    return dict(
        w1m=jnp.asarray(W1m, BF16),
        ra1=jnp.asarray(Ra1), cb1=jnp.asarray(Cb1),
        b1t=jnp.asarray(np.tile(b1, 12)).reshape(1, 120),
        w2m=jnp.asarray(W2m, BF16),
        ra2=jnp.asarray(Ra2), cb2=jnp.asarray(Cb2),
        b2t=jnp.asarray(np.tile(b2, 4)).reshape(1, 80),
        wf1p=jnp.asarray(Wf1p, BF16),
        bf1=jnp.asarray(bf1).reshape(1, 50),
        wf2=jnp.asarray(wf2.T, BF16),
        bf2=jnp.asarray(bf2).reshape(1, 10),
    )


# ---------------------------------------------------------------------------
# Pure-JAX reference (f32) for a correctness check
# ---------------------------------------------------------------------------

def reference_forward(x_nchw, p):
    B = x_nchw.shape[0]
    y = jax.lax.conv_general_dilated(
        x_nchw, p["w1"], (1, 1), "VALID",
        dimension_numbers=("NCHW", "OIHW", "NCHW")) + p["b1"].reshape(1, 10, 1, 1)
    y = jnp.maximum(y.reshape(B, 10, 12, 2, 12, 2).max(axis=(3, 5)), 0.0)
    y = jax.lax.conv_general_dilated(
        y, p["w2"], (1, 1), "VALID",
        dimension_numbers=("NCHW", "OIHW", "NCHW")) + p["b2"].reshape(1, 20, 1, 1)
    y = jnp.maximum(y.reshape(B, 20, 4, 2, 4, 2).max(axis=(3, 5)), 0.0)
    flat = y.reshape(B, 320)
    h = jnp.maximum(flat @ p["wf1"].T + p["bf1"], 0.0)
    logits = h @ p["wf2"].T + p["bf2"]
    return jax.nn.log_softmax(logits, axis=1)


# ---------------------------------------------------------------------------

if __name__ == "__main__":
    key = jax.random.PRNGKey(0)
    k_x, k_p = jax.random.split(key)
    # MNIST-style input (batch=2, 1 channel, 28x28 so the flatten is 320).
    x = jax.random.normal(k_x, (2, 1, 28, 28), dtype=jnp.float32)
    params = init_torch_params(k_p)
    consts = build_kernel_consts(params)

    out = net_forward_jit(x, consts)
    out = jax.block_until_ready(out)

    assert out.shape == (2, 10), out.shape
    # rows must be valid log-probabilities
    assert jnp.allclose(jnp.sum(jnp.exp(out), axis=1), 1.0, atol=1e-3)
    # match the f32 reference (bf16 MXU inputs -> small tolerance)
    ref = reference_forward(x, params)
    max_err = float(jnp.max(jnp.abs(out - ref)))
    assert max_err < 5e-2, f"max abs diff vs reference: {max_err}"
    print("KERNEL_OK")
</pallas_src>

<mosaic_0001>
module attributes {stable_mosaic.version = 11 : i64} {
  func.func @_fused_net_kernel(%arg0: i32, %arg1: memref<1x28x28xf32, #tpu.memory_space<vmem>>, %arg2: memref<5x28x240xbf16, #tpu.memory_space<vmem>>, %arg3: memref<2x12x24xf32, #tpu.memory_space<vmem>>, %arg4: memref<2x240x120xf32, #tpu.memory_space<vmem>>, %arg5: memref<1x120xf32, #tpu.memory_space<vmem>>, %arg6: memref<5x120x160xbf16, #tpu.memory_space<vmem>>, %arg7: memref<2x4x8xf32, #tpu.memory_space<vmem>>, %arg8: memref<2x160x80xf32, #tpu.memory_space<vmem>>, %arg9: memref<1x80xf32, #tpu.memory_space<vmem>>, %arg10: memref<4x80x50xbf16, #tpu.memory_space<vmem>>, %arg11: memref<1x50xf32, #tpu.memory_space<vmem>>, %arg12: memref<50x10xbf16, #tpu.memory_space<vmem>>, %arg13: memref<1x10xf32, #tpu.memory_space<vmem>>, %arg14: memref<1x1x10xf32, #tpu.memory_space<vmem>>, %arg15: memref<12x120xf32, #tpu.memory_space<vmem>>, %arg16: memref<4x80xf32, #tpu.memory_space<vmem>>) attributes {dimension_semantics = [#tpu.dimension_semantics<parallel>], iteration_bounds = array<i64: 2>, scalar_prefetch = 0 : i64, scratch_operands = 2 : i64, tpu.core_type = #tpu.core_type<tc>, window_params = [{transform_indices = @transform_0, window_bounds = array<i64: 1, 28, 28>}, {pipeline_mode = #tpu.pipeline_mode<synchronous>, transform_indices = @transform_1, window_bounds = array<i64: 5, 28, 240>}, {pipeline_mode = #tpu.pipeline_mode<synchronous>, transform_indices = @transform_2, window_bounds = array<i64: 2, 12, 24>}, {pipeline_mode = #tpu.pipeline_mode<synchronous>, transform_indices = @transform_3, window_bounds = array<i64: 2, 240, 120>}, {pipeline_mode = #tpu.pipeline_mode<synchronous>, transform_indices = @transform_4, window_bounds = array<i64: 1, 120>}, {pipeline_mode = #tpu.pipeline_mode<synchronous>, transform_indices = @transform_5, window_bounds = array<i64: 5, 120, 160>}, {pipeline_mode = #tpu.pipeline_mode<synchronous>, transform_indices = @transform_6, window_bounds = array<i64: 2, 4, 8>}, {pipeline_mode = #tpu.pipeline_mode<synchronous>, transform_indices = @transform_7, window_bounds = array<i64: 2, 160, 80>}, {pipeline_mode = #tpu.pipeline_mode<synchronous>, transform_indices = @transform_8, window_bounds = array<i64: 1, 80>}, {pipeline_mode = #tpu.pipeline_mode<synchronous>, transform_indices = @transform_9, window_bounds = array<i64: 4, 80, 50>}, {pipeline_mode = #tpu.pipeline_mode<synchronous>, transform_indices = @transform_10, window_bounds = array<i64: 1, 50>}, {pipeline_mode = #tpu.pipeline_mode<synchronous>, transform_indices = @transform_11, window_bounds = array<i64: 50, 10>}, {pipeline_mode = #tpu.pipeline_mode<synchronous>, transform_indices = @transform_12, window_bounds = array<i64: 1, 10>}, {transform_indices = @transform_13, window_bounds = array<i64: 1, 1, 10>}]} {
    %c0 = arith.constant 0 : index
    %c0_0 = arith.constant 0 : index
    %c0_1 = arith.constant 0 : index
    %0 = vector.load %arg1[%c0, %c0_0, %c0_1] : memref<1x28x28xf32, #tpu.memory_space<vmem>>, vector<1x24x28xf32>
    %1 = vector.shape_cast %0 : vector<1x24x28xf32> to vector<24x28xf32>
    %2 = arith.truncf %1 : vector<24x28xf32> to vector<24x28xbf16>
    %c0_2 = arith.constant 0 : index
    %c0_3 = arith.constant 0 : index
    %c0_4 = arith.constant 0 : index
    %3 = vector.load %arg2[%c0_2, %c0_3, %c0_4] : memref<5x28x240xbf16, #tpu.memory_space<vmem>>, vector<1x28x240xbf16>
    %4 = vector.shape_cast %3 : vector<1x28x240xbf16> to vector<28x240xbf16>
    %cst = arith.constant dense<0.000000e+00> : vector<24x240xf32>
    %5 = tpu.matmul %2, %4, %cst {dimension_numbers = #tpu.dot_dimension_numbers<[1], [0], [0], [1], [0, 0, 1, 1], [], []>} : vector<24x28xbf16>, vector<28x240xbf16>, vector<24x240xf32> -> vector<24x240xf32>
    %c0_5 = arith.constant 0 : index
    %c1 = arith.constant 1 : index
    %c0_6 = arith.constant 0 : index
    %6 = vector.load %arg1[%c0_5, %c1, %c0_6] : memref<1x28x28xf32, #tpu.memory_space<vmem>>, vector<1x24x28xf32>
    %7 = vector.shape_cast %6 : vector<1x24x28xf32> to vector<24x28xf32>
    %8 = arith.truncf %7 : vector<24x28xf32> to vector<24x28xbf16>
    %c1_7 = arith.constant 1 : index
    %c0_8 = arith.constant 0 : index
    %c0_9 = arith.constant 0 : index
    %9 = vector.load %arg2[%c1_7, %c0_8, %c0_9] : memref<5x28x240xbf16, #tpu.memory_space<vmem>>, vector<1x28x240xbf16>
    %10 = vector.shape_cast %9 : vector<1x28x240xbf16> to vector<28x240xbf16>
    %cst_10 = arith.constant dense<0.000000e+00> : vector<24x240xf32>
    %11 = tpu.matmul %8, %10, %cst_10 {dimension_numbers = #tpu.dot_dimension_numbers<[1], [0], [0], [1], [0, 0, 1, 1], [], []>} : vector<24x28xbf16>, vector<28x240xbf16>, vector<24x240xf32> -> vector<24x240xf32>
    %12 = arith.addf %5, %11 : vector<24x240xf32>
    %c0_11 = arith.constant 0 : index
    %c2 = arith.constant 2 : index
    %c0_12 = arith.constant 0 : index
    %13 = vector.load %arg1[%c0_11, %c2, %c0_12] : memref<1x28x28xf32, #tpu.memory_space<vmem>>, vector<1x24x28xf32>
    %14 = vector.shape_cast %13 : vector<1x24x28xf32> to vector<24x28xf32>
    %15 = arith.truncf %14 : vector<24x28xf32> to vector<24x28xbf16>
    %c2_13 = arith.constant 2 : index
    %c0_14 = arith.constant 0 : index
    %c0_15 = arith.constant 0 : index
    %16 = vector.load %arg2[%c2_13, %c0_14, %c0_15] : memref<5x28x240xbf16, #tpu.memory_space<vmem>>, vector<1x28x240xbf16>
    %17 = vector.shape_cast %16 : vector<1x28x240xbf16> to vector<28x240xbf16>
    %cst_16 = arith.constant dense<0.000000e+00> : vector<24x240xf32>
    %18 = tpu.matmul %15, %17, %cst_16 {dimension_numbers = #tpu.dot_dimension_numbers<[1], [0], [0], [1], [0, 0, 1, 1], [], []>} : vector<24x28xbf16>, vector<28x240xbf16>, vector<24x240xf32> -> vector<24x240xf32>
    %19 = arith.addf %12, %18 : vector<24x240xf32>
    %c0_17 = arith.constant 0 : index
    %c3 = arith.constant 3 : index
    %c0_18 = arith.constant 0 : index
    %20 = vector.load %arg1[%c0_17, %c3, %c0_18] : memref<1x28x28xf32, #tpu.memory_space<vmem>>, vector<1x24x28xf32>
    %21 = vector.shape_cast %20 : vector<1x24x28xf32> to vector<24x28xf32>
    %22 = arith.truncf %21 : vector<24x28xf32> to vector<24x28xbf16>
    %c3_19 = arith.constant 3 : index
    %c0_20 = arith.constant 0 : index
    %c0_21 = arith.constant 0 : index
    %23 = vector.load %arg2[%c3_19, %c0_20, %c0_21] : memref<5x28x240xbf16, #tpu.memory_space<vmem>>, vector<1x28x240xbf16>
    %24 = vector.shape_cast %23 : vector<1x28x240xbf16> to vector<28x240xbf16>
    %cst_22 = arith.constant dense<0.000000e+00> : vector<24x240xf32>
    %25 = tpu.matmul %22, %24, %cst_22 {dimension_numbers = #tpu.dot_dimension_numbers<[1], [0], [0], [1], [0, 0, 1, 1], [], []>} : vector<24x28xbf16>, vector<28x240xbf16>, vector<24x240xf32> -> vector<24x240xf32>
    %26 = arith.addf %19, %25 : vector<24x240xf32>
    %c0_23 = arith.constant 0 : index
    %c4 = arith.constant 4 : index
    %c0_24 = arith.constant 0 : index
    %27 = vector.load %arg1[%c0_23, %c4, %c0_24] : memref<1x28x28xf32, #tpu.memory_space<vmem>>, vector<1x24x28xf32>
    %28 = vector.shape_cast %27 : vector<1x24x28xf32> to vector<24x28xf32>
    %29 = arith.truncf %28 : vector<24x28xf32> to vector<24x28xbf16>
    %c4_25 = arith.constant 4 : index
    %c0_26 = arith.constant 0 : index
    %c0_27 = arith.constant 0 : index
    %30 = vector.load %arg2[%c4_25, %c0_26, %c0_27] : memref<5x28x240xbf16, #tpu.memory_space<vmem>>, vector<1x28x240xbf16>
    %31 = vector.shape_cast %30 : vector<1x28x240xbf16> to vector<28x240xbf16>
    %cst_28 = arith.constant dense<0.000000e+00> : vector<24x240xf32>
    %32 = tpu.matmul %29, %31, %cst_28 {dimension_numbers = #tpu.dot_dimension_numbers<[1], [0], [0], [1], [0, 0, 1, 1], [], []>} : vector<24x28xbf16>, vector<28x240xbf16>, vector<24x240xf32> -> vector<24x240xf32>
    %33 = arith.addf %26, %32 : vector<24x240xf32>
    %c0_29 = arith.constant 0 : index
    %c0_30 = arith.constant 0 : index
    %c0_31 = arith.constant 0 : index
    %34 = vector.load %arg3[%c0_29, %c0_30, %c0_31] : memref<2x12x24xf32, #tpu.memory_space<vmem>>, vector<1x12x24xf32>
    %35 = vector.shape_cast %34 : vector<1x12x24xf32> to vector<12x24xf32>
    %cst_32 = arith.constant dense<0.000000e+00> : vector<12x240xf32>
    %36 = tpu.matmul %35, %33, %cst_32 {dimension_numbers = #tpu.dot_dimension_numbers<[1], [0], [0], [1], [0, 0, 1, 1], [], []>} : vector<12x24xf32>, vector<24x240xf32>, vector<12x240xf32> -> vector<12x240xf32>
    %c0_33 = arith.constant 0 : index
    %c0_34 = arith.constant 0 : index
    %c0_35 = arith.constant 0 : index
    %37 = vector.load %arg4[%c0_33, %c0_34, %c0_35] : memref<2x240x120xf32, #tpu.memory_space<vmem>>, vector<1x240x120xf32>
    %38 = vector.shape_cast %37 : vector<1x240x120xf32> to vector<240x120xf32>
    %cst_36 = arith.constant dense<0.000000e+00> : vector<12x120xf32>
    %39 = tpu.matmul %36, %38, %cst_36 {dimension_numbers = #tpu.dot_dimension_numbers<[1], [0], [0], [1], [0, 0, 1, 1], [], []>} : vector<12x240xf32>, vector<240x120xf32>, vector<12x120xf32> -> vector<12x120xf32>
    %c1_37 = arith.constant 1 : index
    %c0_38 = arith.constant 0 : index
    %c0_39 = arith.constant 0 : index
    %40 = vector.load %arg4[%c1_37, %c0_38, %c0_39] : memref<2x240x120xf32, #tpu.memory_space<vmem>>, vector<1x240x120xf32>
    %41 = vector.shape_cast %40 : vector<1x240x120xf32> to vector<240x120xf32>
    %cst_40 = arith.constant dense<0.000000e+00> : vector<12x120xf32>
    %42 = tpu.matmul %36, %41, %cst_40 {dimension_numbers = #tpu.dot_dimension_numbers<[1], [0], [0], [1], [0, 0, 1, 1], [], []>} : vector<12x240xf32>, vector<240x120xf32>, vector<12x120xf32> -> vector<12x120xf32>
    %c1_41 = arith.constant 1 : index
    %c0_42 = arith.constant 0 : index
    %c0_43 = arith.constant 0 : index
    %43 = vector.load %arg3[%c1_41, %c0_42, %c0_43] : memref<2x12x24xf32, #tpu.memory_space<vmem>>, vector<1x12x24xf32>
    %44 = vector.shape_cast %43 : vector<1x12x24xf32> to vector<12x24xf32>
    %cst_44 = arith.constant dense<0.000000e+00> : vector<12x240xf32>
    %45 = tpu.matmul %44, %33, %cst_44 {dimension_numbers = #tpu.dot_dimension_numbers<[1], [0], [0], [1], [0, 0, 1, 1], [], []>} : vector<12x24xf32>, vector<24x240xf32>, vector<12x240xf32> -> vector<12x240xf32>
    %c0_45 = arith.constant 0 : index
    %c0_46 = arith.constant 0 : index
    %c0_47 = arith.constant 0 : index
    %46 = vector.load %arg4[%c0_45, %c0_46, %c0_47] : memref<2x240x120xf32, #tpu.memory_space<vmem>>, vector<1x240x120xf32>
    %47 = vector.shape_cast %46 : vector<1x240x120xf32> to vector<240x120xf32>
    %cst_48 = arith.constant dense<0.000000e+00> : vector<12x120xf32>
    %48 = tpu.matmul %45, %47, %cst_48 {dimension_numbers = #tpu.dot_dimension_numbers<[1], [0], [0], [1], [0, 0, 1, 1], [], []>} : vector<12x240xf32>, vector<240x120xf32>, vector<12x120xf32> -> vector<12x120xf32>
    %c1_49 = arith.constant 1 : index
    %c0_50 = arith.constant 0 : index
    %c0_51 = arith.constant 0 : index
    %49 = vector.load %arg4[%c1_49, %c0_50, %c0_51] : memref<2x240x120xf32, #tpu.memory_space<vmem>>, vector<1x240x120xf32>
    %50 = vector.shape_cast %49 : vector<1x240x120xf32> to vector<240x120xf32>
    %cst_52 = arith.constant dense<0.000000e+00> : vector<12x120xf32>
    %51 = tpu.matmul %45, %50, %cst_52 {dimension_numbers = #tpu.dot_dimension_numbers<[1], [0], [0], [1], [0, 0, 1, 1], [], []>} : vector<12x240xf32>, vector<240x120xf32>, vector<12x120xf32> -> vector<12x120xf32>
    %52 = arith.maximumf %39, %42 : vector<12x120xf32>
    %53 = arith.maximumf %48, %51 : vector<12x120xf32>
    %54 = arith.maximumf %52, %53 : vector<12x120xf32>
    %c0_53 = arith.constant 0 : index
    %c0_54 = arith.constant 0 : index
    %55 = vector.load %arg5[%c0_53, %c0_54] : memref<1x120xf32, #tpu.memory_space<vmem>>, vector<1x120xf32>
    %56 = vector.broadcast %55 : vector<1x120xf32> to vector<12x120xf32>
    %57 = arith.addf %54, %56 : vector<12x120xf32>
    %cst_55 = arith.constant 0.000000e+00 : f32
    %58 = vector.broadcast %cst_55 : f32 to vector<12x120xf32>
    %59 = arith.maximumf %57, %58 : vector<12x120xf32>
    %c0_56 = arith.constant 0 : index
    %c0_57 = arith.constant 0 : index
    %60 = vector.load %arg15[%c0_56, %c0_57] : memref<12x120xf32, #tpu.memory_space<vmem>>, vector<12x120xf32>
    tpu.vector_store %arg15[%c0_56, %c0_57], %59 {strides = array<i32>} : memref<12x120xf32, #tpu.memory_space<vmem>>, vector<12x120xf32>,
    %c0_58 = arith.constant 0 : index
    %c0_59 = arith.constant 0 : index
    %61 = vector.load %arg15[%c0_58, %c0_59] : memref<12x120xf32, #tpu.memory_space<vmem>>, vector<8x120xf32>
    %62 = arith.truncf %61 : vector<8x120xf32> to vector<8x120xbf16>
    %c0_60 = arith.constant 0 : index
    %c0_61 = arith.constant 0 : index
    %c0_62 = arith.constant 0 : index
    %63 = vector.load %arg6[%c0_60, %c0_61, %c0_62] : memref<5x120x160xbf16, #tpu.memory_space<vmem>>, vector<1x120x160xbf16>
    %64 = vector.shape_cast %63 : vector<1x120x160xbf16> to vector<120x160xbf16>
    %cst_63 = arith.constant dense<0.000000e+00> : vector<8x160xf32>
    %65 = tpu.matmul %62, %64, %cst_63 {dimension_numbers = #tpu.dot_dimension_numbers<[1], [0], [0], [1], [0, 0, 1, 1], [], []>} : vector<8x120xbf16>, vector<120x160xbf16>, vector<8x160xf32> -> vector<8x160xf32>
    %c1_64 = arith.constant 1 : index
    %c0_65 = arith.constant 0 : index
    %66 = vector.load %arg15[%c1_64, %c0_65] : memref<12x120xf32, #tpu.memory_space<vmem>>, vector<8x120xf32>
    %67 = arith.truncf %66 : vector<8x120xf32> to vector<8x120xbf16>
    %c1_66 = arith.constant 1 : index
    %c0_67 = arith.constant 0 : index
    %c0_68 = arith.constant 0 : index
    %68 = vector.load %arg6[%c1_66, %c0_67, %c0_68] : memref<5x120x160xbf16, #tpu.memory_space<vmem>>, vector<1x120x160xbf16>
    %69 = vector.shape_cast %68 : vector<1x120x160xbf16> to vector<120x160xbf16>
    %cst_69 = arith.constant dense<0.000000e+00> : vector<8x160xf32>
    %70 = tpu.matmul %67, %69, %cst_69 {dimension_numbers = #tpu.dot_dimension_numbers<[1], [0], [0], [1], [0, 0, 1, 1], [], []>} : vector<8x120xbf16>, vector<120x160xbf16>, vector<8x160xf32> -> vector<8x160xf32>
    %71 = arith.addf %65, %70 : vector<8x160xf32>
    %c2_70 = arith.constant 2 : index
    %c0_71 = arith.constant 0 : index
    %72 = vector.load %arg15[%c2_70, %c0_71] : memref<12x120xf32, #tpu.memory_space<vmem>>, vector<8x120xf32>
    %73 = arith.truncf %72 : vector<8x120xf32> to vector<8x120xbf16>
    %c2_72 = arith.constant 2 : index
    %c0_73 = arith.constant 0 : index
    %c0_74 = arith.constant 0 : index
    %74 = vector.load %arg6[%c2_72, %c0_73, %c0_74] : memref<5x120x160xbf16, #tpu.memory_space<vmem>>, vector<1x120x160xbf16>
    %75 = vector.shape_cast %74 : vector<1x120x160xbf16> to vector<120x160xbf16>
    %cst_75 = arith.constant dense<0.000000e+00> : vector<8x160xf32>
    %76 = tpu.matmul %73, %75, %cst_75 {dimension_numbers = #tpu.dot_dimension_numbers<[1], [0], [0], [1], [0, 0, 1, 1], [], []>} : vector<8x120xbf16>, vector<120x160xbf16>, vector<8x160xf32> -> vector<8x160xf32>
    %77 = arith.addf %71, %76 : vector<8x160xf32>
    %c3_76 = arith.constant 3 : index
    %c0_77 = arith.constant 0 : index
    %78 = vector.load %arg15[%c3_76, %c0_77] : memref<12x120xf32, #tpu.memory_space<vmem>>, vector<8x120xf32>
    %79 = arith.truncf %78 : vector<8x120xf32> to vector<8x120xbf16>
    %c3_78 = arith.constant 3 : index
    %c0_79 = arith.constant 0 : index
    %c0_80 = arith.constant 0 : index
    %80 = vector.load %arg6[%c3_78, %c0_79, %c0_80] : memref<5x120x160xbf16, #tpu.memory_space<vmem>>, vector<1x120x160xbf16>
    %81 = vector.shape_cast %80 : vector<1x120x160xbf16> to vector<120x160xbf16>
    %cst_81 = arith.constant dense<0.000000e+00> : vector<8x160xf32>
    %82 = tpu.matmul %79, %81, %cst_81 {dimension_numbers = #tpu.dot_dimension_numbers<[1], [0], [0], [1], [0, 0, 1, 1], [], []>} : vector<8x120xbf16>, vector<120x160xbf16>, vector<8x160xf32> -> vector<8x160xf32>
    %83 = arith.addf %77, %82 : vector<8x160xf32>
    %c4_82 = arith.constant 4 : index
    %c0_83 = arith.constant 0 : index
    %84 = vector.load %arg15[%c4_82, %c0_83] : memref<12x120xf32, #tpu.memory_space<vmem>>, vector<8x120xf32>
    %85 = arith.truncf %84 : vector<8x120xf32> to vector<8x120xbf16>
    %c4_84 = arith.constant 4 : index
    %c0_85 = arith.constant 0 : index
    %c0_86 = arith.constant 0 : index
    %86 = vector.load %arg6[%c4_84, %c0_85, %c0_86] : memref<5x120x160xbf16, #tpu.memory_space<vmem>>, vector<1x120x160xbf16>
    %87 = vector.shape_cast %86 : vector<1x120x160xbf16> to vector<120x160xbf16>
    %cst_87 = arith.constant dense<0.000000e+00> : vector<8x160xf32>
    %88 = tpu.matmul %85, %87, %cst_87 {dimension_numbers = #tpu.dot_dimension_numbers<[1], [0], [0], [1], [0, 0, 1, 1], [], []>} : vector<8x120xbf16>, vector<120x160xbf16>, vector<8x160xf32> -> vector<8x160xf32>
    %89 = arith.addf %83, %88 : vector<8x160xf32>
    %c0_88 = arith.constant 0 : index
    %c0_89 = arith.constant 0 : index
    %c0_90 = arith.constant 0 : index
    %90 = vector.load %arg7[%c0_88, %c0_89, %c0_90] : memref<2x4x8xf32, #tpu.memory_space<vmem>>, vector<1x4x8xf32>
    %91 = vector.shape_cast %90 : vector<1x4x8xf32> to vector<4x8xf32>
    %cst_91 = arith.constant dense<0.000000e+00> : vector<4x160xf32>
    %92 = tpu.matmul %91, %89, %cst_91 {dimension_numbers = #tpu.dot_dimension_numbers<[1], [0], [0], [1], [0, 0, 1, 1], [], []>} : vector<4x8xf32>, vector<8x160xf32>, vector<4x160xf32> -> vector<4x160xf32>
    %c0_92 = arith.constant 0 : index
    %c0_93 = arith.constant 0 : index
    %c0_94 = arith.constant 0 : index
    %93 = vector.load %arg8[%c0_92, %c0_93, %c0_94] : memref<2x160x80xf32, #tpu.memory_space<vmem>>, vector<1x160x80xf32>
    %94 = vector.shape_cast %93 : vector<1x160x80xf32> to vector<160x80xf32>
    %cst_95 = arith.constant dense<0.000000e+00> : vector<4x80xf32>
    %95 = tpu.matmul %92, %94, %cst_95 {dimension_numbers = #tpu.dot_dimension_numbers<[1], [0], [0], [1], [0, 0, 1, 1], [], []>} : vector<4x160xf32>, vector<160x80xf32>, vector<4x80xf32> -> vector<4x80xf32>
    %c1_96 = arith.constant 1 : index
    %c0_97 = arith.constant 0 : index
    %c0_98 = arith.constant 0 : index
    %96 = vector.load %arg8[%c1_96, %c0_97, %c0_98] : memref<2x160x80xf32, #tpu.memory_space<vmem>>, vector<1x160x80xf32>
    %97 = vector.shape_cast %96 : vector<1x160x80xf32> to vector<160x80xf32>
    %cst_99 = arith.constant dense<0.000000e+00> : vector<4x80xf32>
    %98 = tpu.matmul %92, %97, %cst_99 {dimension_numbers = #tpu.dot_dimension_numbers<[1], [0], [0], [1], [0, 0, 1, 1], [], []>} : vector<4x160xf32>, vector<160x80xf32>, vector<4x80xf32> -> vector<4x80xf32>
    %c1_100 = arith.constant 1 : index
    %c0_101 = arith.constant 0 : index
    %c0_102 = arith.constant 0 : index
    %99 = vector.load %arg7[%c1_100, %c0_101, %c0_102] : memref<2x4x8xf32, #tpu.memory_space<vmem>>, vector<1x4x8xf32>
    %100 = vector.shape_cast %99 : vector<1x4x8xf32> to vector<4x8xf32>
    %cst_103 = arith.constant dense<0.000000e+00> : vector<4x160xf32>
    %101 = tpu.matmul %100, %89, %cst_103 {dimension_numbers = #tpu.dot_dimension_numbers<[1], [0], [0], [1], [0, 0, 1, 1], [], []>} : vector<4x8xf32>, vector<8x160xf32>, vector<4x160xf32> -> vector<4x160xf32>
    %c0_104 = arith.constant 0 : index
    %c0_105 = arith.constant 0 : index
    %c0_106 = arith.constant 0 : index
    %102 = vector.load %arg8[%c0_104, %c0_105, %c0_106] : memref<2x160x80xf32, #tpu.memory_space<vmem>>, vector<1x160x80xf32>
    %103 = vector.shape_cast %102 : vector<1x160x80xf32> to vector<160x80xf32>
    %cst_107 = arith.constant dense<0.000000e+00> : vector<4x80xf32>
    %104 = tpu.matmul %101, %103, %cst_107 {dimension_numbers = #tpu.dot_dimension_numbers<[1], [0], [0], [1], [0, 0, 1, 1], [], []>} : vector<4x160xf32>, vector<160x80xf32>, vector<4x80xf32> -> vector<4x80xf32>
    %c1_108 = arith.constant 1 : index
    %c0_109 = arith.constant 0 : index
    %c0_110 = arith.constant 0 : index
    %105 = vector.load %arg8[%c1_108, %c0_109, %c0_110] : memref<2x160x80xf32, #tpu.memory_space<vmem>>, vector<1x160x80xf32>
    %106 = vector.shape_cast %105 : vector<1x160x80xf32> to vector<160x80xf32>
    %cst_111 = arith.constant dense<0.000000e+00> : vector<4x80xf32>
    %107 = tpu.matmul %101, %106, %cst_111 {dimension_numbers = #tpu.dot_dimension_numbers<[1], [0], [0], [1], [0, 0, 1, 1], [], []>} : vector<4x160xf32>, vector<160x80xf32>, vector<4x80xf32> -> vector<4x80xf32>
    %108 = arith.maximumf %95, %98 : vector<4x80xf32>
    %109 = arith.maximumf %104, %107 : vector<4x80xf32>
    %110 = arith.maximumf %108, %109 : vector<4x80xf32>
    %c0_112 = arith.constant 0 : index
    %c0_113 = arith.constant 0 : index
    %111 = vector.load %arg9[%c0_112, %c0_113] : memref<1x80xf32, #tpu.memory_space<vmem>>, vector<1x80xf32>
    %112 = vector.broadcast %111 : vector<1x80xf32> to vector<4x80xf32>
    %113 = arith.addf %110, %112 : vector<4x80xf32>
    %cst_114 = arith.constant 0.000000e+00 : f32
    %114 = vector.broadcast %cst_114 : f32 to vector<4x80xf32>
    %115 = arith.maximumf %113, %114 : vector<4x80xf32>
    %c0_115 = arith.constant 0 : index
    %c0_116 = arith.constant 0 : index
    %116 = vector.load %arg16[%c0_115, %c0_116] : memref<4x80xf32, #tpu.memory_space<vmem>>, vector<4x80xf32>
    tpu.vector_store %arg16[%c0_115, %c0_116], %115 {strides = array<i32>} : memref<4x80xf32, #tpu.memory_space<vmem>>, vector<4x80xf32>,
    %c0_117 = arith.constant 0 : index
    %c0_118 = arith.constant 0 : index
    %117 = vector.load %arg16[%c0_117, %c0_118] : memref<4x80xf32, #tpu.memory_space<vmem>>, vector<1x80xf32>
    %118 = arith.truncf %117 : vector<1x80xf32> to vector<1x80xbf16>
    %c0_119 = arith.constant 0 : index
    %c0_120 = arith.constant 0 : index
    %c0_121 = arith.constant 0 : index
    %119 = vector.load %arg10[%c0_119, %c0_120, %c0_121] : memref<4x80x50xbf16, #tpu.memory_space<vmem>>, vector<1x80x50xbf16>
    %120 = vector.shape_cast %119 : vector<1x80x50xbf16> to vector<80x50xbf16>
    %cst_122 = arith.constant dense<0.000000e+00> : vector<1x50xf32>
    %121 = tpu.matmul %118, %120, %cst_122 {dimension_numbers = #tpu.dot_dimension_numbers<[1], [0], [0], [1], [0, 0, 1, 1], [], []>} : vector<1x80xbf16>, vector<80x50xbf16>, vector<1x50xf32> -> vector<1x50xf32>
    %c1_123 = arith.constant 1 : index
    %c0_124 = arith.constant 0 : index
    %122 = vector.load %arg16[%c1_123, %c0_124] : memref<4x80xf32, #tpu.memory_space<vmem>>, vector<1x80xf32>
    %123 = arith.truncf %122 : vector<1x80xf32> to vector<1x80xbf16>
    %c1_125 = arith.constant 1 : index
    %c0_126 = arith.constant 0 : index
    %c0_127 = arith.constant 0 : index
    %124 = vector.load %arg10[%c1_125, %c0_126, %c0_127] : memref<4x80x50xbf16, #tpu.memory_space<vmem>>, vector<1x80x50xbf16>
    %125 = vector.shape_cast %124 : vector<1x80x50xbf16> to vector<80x50xbf16>
    %cst_128 = arith.constant dense<0.000000e+00> : vector<1x50xf32>
    %126 = tpu.matmul %123, %125, %cst_128 {dimension_numbers = #tpu.dot_dimension_numbers<[1], [0], [0], [1], [0, 0, 1, 1], [], []>} : vector<1x80xbf16>, vector<80x50xbf16>, vector<1x50xf32> -> vector<1x50xf32>
    %127 = arith.addf %121, %126 : vector<1x50xf32>
    %c2_129 = arith.constant 2 : index
    %c0_130 = arith.constant 0 : index
    %128 = vector.load %arg16[%c2_129, %c0_130] : memref<4x80xf32, #tpu.memory_space<vmem>>, vector<1x80xf32>
    %129 = arith.truncf %128 : vector<1x80xf32> to vector<1x80xbf16>
    %c2_131 = arith.constant 2 : index
    %c0_132 = arith.constant 0 : index
    %c0_133 = arith.constant 0 : index
    %130 = vector.load %arg10[%c2_131, %c0_132, %c0_133] : memref<4x80x50xbf16, #tpu.memory_space<vmem>>, vector<1x80x50xbf16>
    %131 = vector.shape_cast %130 : vector<1x80x50xbf16> to vector<80x50xbf16>
    %cst_134 = arith.constant dense<0.000000e+00> : vector<1x50xf32>
    %132 = tpu.matmul %129, %131, %cst_134 {dimension_numbers = #tpu.dot_dimension_numbers<[1], [0], [0], [1], [0, 0, 1, 1], [], []>} : vector<1x80xbf16>, vector<80x50xbf16>, vector<1x50xf32> -> vector<1x50xf32>
    %133 = arith.addf %127, %132 : vector<1x50xf32>
    %c3_135 = arith.constant 3 : index
    %c0_136 = arith.constant 0 : index
    %134 = vector.load %arg16[%c3_135, %c0_136] : memref<4x80xf32, #tpu.memory_space<vmem>>, vector<1x80xf32>
    %135 = arith.truncf %134 : vector<1x80xf32> to vector<1x80xbf16>
    %c3_137 = arith.constant 3 : index
    %c0_138 = arith.constant 0 : index
    %c0_139 = arith.constant 0 : index
    %136 = vector.load %arg10[%c3_137, %c0_138, %c0_139] : memref<4x80x50xbf16, #tpu.memory_space<vmem>>, vector<1x80x50xbf16>
    %137 = vector.shape_cast %136 : vector<1x80x50xbf16> to vector<80x50xbf16>
    %cst_140 = arith.constant dense<0.000000e+00> : vector<1x50xf32>
    %138 = tpu.matmul %135, %137, %cst_140 {dimension_numbers = #tpu.dot_dimension_numbers<[1], [0], [0], [1], [0, 0, 1, 1], [], []>} : vector<1x80xbf16>, vector<80x50xbf16>, vector<1x50xf32> -> vector<1x50xf32>
    %139 = arith.addf %133, %138 : vector<1x50xf32>
    %c0_141 = arith.constant 0 : index
    %c0_142 = arith.constant 0 : index
    %140 = vector.load %arg11[%c0_141, %c0_142] : memref<1x50xf32, #tpu.memory_space<vmem>>, vector<1x50xf32>
    %141 = arith.addf %139, %140 : vector<1x50xf32>
    %cst_143 = arith.constant 0.000000e+00 : f32
    %142 = vector.broadcast %cst_143 : f32 to vector<1x50xf32>
    %143 = arith.maximumf %141, %142 : vector<1x50xf32>
    %144 = arith.truncf %143 : vector<1x50xf32> to vector<1x50xbf16>
    %c0_144 = arith.constant 0 : index
    %c0_145 = arith.constant 0 : index
    %145 = vector.load %arg12[%c0_144, %c0_145] : memref<50x10xbf16, #tpu.memory_space<vmem>>, vector<50x10xbf16>
    %cst_146 = arith.constant dense<0.000000e+00> : vector<1x10xf32>
    %146 = tpu.matmul %144, %145, %cst_146 {dimension_numbers = #tpu.dot_dimension_numbers<[1], [0], [0], [1], [0, 0, 1, 1], [], []>} : vector<1x50xbf16>, vector<50x10xbf16>, vector<1x10xf32> -> vector<1x10xf32>
    %c0_147 = arith.constant 0 : index
    %c0_148 = arith.constant 0 : index
    %147 = vector.load %arg13[%c0_147, %c0_148] : memref<1x10xf32, #tpu.memory_space<vmem>>, vector<1x10xf32>
    %148 = arith.addf %146, %147 : vector<1x10xf32>
    %cst_149 = arith.constant dense<0xFF800000> : vector<1xf32>
    %149 = vector.multi_reduction <maximumf>, %148, %cst_149 [1] : vector<1x10xf32> to vector<1xf32>
    %150 = vector.shape_cast %149 : vector<1xf32> to vector<1x1xf32>
    %151 = vector.broadcast %150 : vector<1x1xf32> to vector<1x10xf32>
    %152 = arith.subf %148, %151 : vector<1x10xf32>
    %153 = math.exp %152 : vector<1x10xf32>
    %cst_150 = arith.constant dense<0.000000e+00> : vector<1xf32>
    %154 = vector.multi_reduction <add>, %153, %cst_150 [1] : vector<1x10xf32> to vector<1xf32>
    %155 = vector.shape_cast %154 : vector<1xf32> to vector<1x1xf32>
    %156 = math.log %155 : vector<1x1xf32>
    %157 = vector.broadcast %156 : vector<1x1xf32> to vector<1x10xf32>
    %158 = arith.subf %152, %157 : vector<1x10xf32>
    %c0_151 = arith.constant 0 : index
    %c0_152 = arith.constant 0 : index
    %c0_153 = arith.constant 0 : index
    %159 = vector.load %arg14[%c0_151, %c0_152, %c0_153] : memref<1x1x10xf32, #tpu.memory_space<vmem>>, vector<1x1x10xf32>
    %160 = vector.shape_cast %159 : vector<1x1x10xf32> to vector<1x10xf32>
    %161 = vector.shape_cast %158 : vector<1x10xf32> to vector<1x1x10xf32>
    tpu.vector_store %arg14[%c0_151, %c0_152, %c0_153], %161 {strides = array<i32>} : memref<1x1x10xf32, #tpu.memory_space<vmem>>, vector<1x1x10xf32>,
    return
  }
  func.func @transform_0(%arg0: i32) -> (i32, i32, i32) {
    %c0_i32 = arith.constant 0 : i32
    %c0_i32_0 = arith.constant 0 : i32
    %c0_i32_1 = arith.constant 0 : i32
    return %arg0, %c0_i32, %c0_i32_0 : i32, i32, i32
  }
  func.func @transform_1(%arg0: i32) -> (i32, i32, i32) {
    %c0_i32 = arith.constant 0 : i32
    %c0_i32_0 = arith.constant 0 : i32
    %c0_i32_1 = arith.constant 0 : i32
    %c0_i32_2 = arith.constant 0 : i32
    return %c0_i32, %c0_i32_0, %c0_i32_1 : i32, i32, i32
  }
  func.func @transform_2(%arg0: i32) -> (i32, i32, i32) {
    %c0_i32 = arith.constant 0 : i32
    %c0_i32_0 = arith.constant 0 : i32
    %c0_i32_1 = arith.constant 0 : i32
    %c0_i32_2 = arith.constant 0 : i32
    return %c0_i32, %c0_i32_0, %c0_i32_1 : i32, i32, i32
  }
  func.func @transform_3(%arg0: i32) -> (i32, i32, i32) {
    %c0_i32 = arith.constant 0 : i32
    %c0_i32_0 = arith.constant 0 : i32
    %c0_i32_1 = arith.constant 0 : i32
    %c0_i32_2 = arith.constant 0 : i32
    return %c0_i32, %c0_i32_0, %c0_i32_1 : i32, i32, i32
  }
  func.func @transform_4(%arg0: i32) -> (i32, i32) {
    %c0_i32 = arith.constant 0 : i32
    %c0_i32_0 = arith.constant 0 : i32
    %c0_i32_1 = arith.constant 0 : i32
    return %c0_i32, %c0_i32_0 : i32, i32
  }
  func.func @transform_5(%arg0: i32) -> (i32, i32, i32) {
    %c0_i32 = arith.constant 0 : i32
    %c0_i32_0 = arith.constant 0 : i32
    %c0_i32_1 = arith.constant 0 : i32
    %c0_i32_2 = arith.constant 0 : i32
    return %c0_i32, %c0_i32_0, %c0_i32_1 : i32, i32, i32
  }
  func.func @transform_6(%arg0: i32) -> (i32, i32, i32) {
    %c0_i32 = arith.constant 0 : i32
    %c0_i32_0 = arith.constant 0 : i32
    %c0_i32_1 = arith.constant 0 : i32
    %c0_i32_2 = arith.constant 0 : i32
    return %c0_i32, %c0_i32_0, %c0_i32_1 : i32, i32, i32
  }
  func.func @transform_7(%arg0: i32) -> (i32, i32, i32) {
    %c0_i32 = arith.constant 0 : i32
    %c0_i32_0 = arith.constant 0 : i32
    %c0_i32_1 = arith.constant 0 : i32
    %c0_i32_2 = arith.constant 0 : i32
    return %c0_i32, %c0_i32_0, %c0_i32_1 : i32, i32, i32
  }
  func.func @transform_8(%arg0: i32) -> (i32, i32) {
    %c0_i32 = arith.constant 0 : i32
    %c0_i32_0 = arith.constant 0 : i32
    %c0_i32_1 = arith.constant 0 : i32
    return %c0_i32, %c0_i32_0 : i32, i32
  }
  func.func @transform_9(%arg0: i32) -> (i32, i32, i32) {
    %c0_i32 = arith.constant 0 : i32
    %c0_i32_0 = arith.constant 0 : i32
    %c0_i32_1 = arith.constant 0 : i32
    %c0_i32_2 = arith.constant 0 : i32
    return %c0_i32, %c0_i32_0, %c0_i32_1 : i32, i32, i32
  }
  func.func @transform_10(%arg0: i32) -> (i32, i32) {
    %c0_i32 = arith.constant 0 : i32
    %c0_i32_0 = arith.constant 0 : i32
    %c0_i32_1 = arith.constant 0 : i32
    return %c0_i32, %c0_i32_0 : i32, i32
  }
  func.func @transform_11(%arg0: i32) -> (i32, i32) {
    %c0_i32 = arith.constant 0 : i32
    %c0_i32_0 = arith.constant 0 : i32
    %c0_i32_1 = arith.constant 0 : i32
    return %c0_i32, %c0_i32_0 : i32, i32
  }
  func.func @transform_12(%arg0: i32) -> (i32, i32) {
    %c0_i32 = arith.constant 0 : i32
    %c0_i32_0 = arith.constant 0 : i32
    %c0_i32_1 = arith.constant 0 : i32
    return %c0_i32, %c0_i32_0 : i32, i32
  }
  func.func @transform_13(%arg0: i32) -> (i32, i32, i32) {
    %c0_i32 = arith.constant 0 : i32
    %c0_i32_0 = arith.constant 0 : i32
    %c0_i32_1 = arith.constant 0 : i32
    return %arg0, %c0_i32, %c0_i32_0 : i32, i32, i32
  }
}

</mosaic_0001>

<bundles_post_ra>
// kernel: net_forward.1
= control target key start
LH: loop header
LB: loop body
LE: loop exit
PB: predicated region body
PF: predicated region fallthrough
CT: control target
= control target key end

     0   :  { %s5471_s0 = inlined_call_operand.vmem [shape: f32[2,28,28], index: 0, kind: input, shape index: {}]   ;;  %s5472_s1 = inlined_call_operand.vmem [shape: bf16[5,28,240], index: 1, kind: input, shape index: {}]   ;;  %s5473_s2 = inlined_call_operand.vmem [shape: f32[2,12,24], index: 2, kind: input, shape index: {}]   ;;  %s5474_s3 = inlined_call_operand.vmem [shape: f32[2,240,120], index: 3, kind: input, shape index: {}]   ;;  %s5475_s4 = inlined_call_operand.vmem [shape: f32[1,120], index: 4, kind: input, shape index: {}]   ;;  %s5476_s5 = inlined_call_operand.vmem [shape: bf16[5,120,160], index: 5, kind: input, shape index: {}]   ;;  %s5477_s6 = inlined_call_operand.vmem [shape: f32[2,4,8], index: 6, kind: input, shape index: {}]   ;;  %s5478_s7 = inlined_call_operand.vmem [shape: f32[2,160,80], index: 7, kind: input, shape index: {}]   ;;  %s5479_s8 = inlined_call_operand.vmem [shape: f32[1,80], index: 8, kind: input, shape index: {}]   ;;  %s5480_s9 = inlined_call_operand.vmem [shape: bf16[4,80,50], index: 9, kind: input, shape index: {}]   ;;  %s5481_s10 = inlined_call_operand.vmem [shape: f32[1,50], index: 10, kind: input, shape index: {}]   ;;  %s5482_s11 = inlined_call_operand.vmem [shape: bf16[50,10], index: 11, kind: input, shape index: {}]   ;;  %s5483_s12 = inlined_call_operand.vmem [shape: f32[1,10], index: 12, kind: input, shape index: {}]   ;;  %s5484_s13 = inlined_call_operand.hbm [shape: f32[2,1,10], index: 13, kind: output, shape index: {}]  }
   0x1   :  { %5486 = sst [smem:[#allocation9_spill]] %s5471_s0 }
   0x2   :  { %18 = vsyncpa [#allocation5], 0 }
   0x3   :  { %20 = vsyncpa [#allocation5 + $0x1], 0  ;;  %s4355_s25 = smov 0   ;;  %s4357_s26 = smov 0  }
   0x4   :  { %s4359_s27 = smov 0   ;;  %s4361_s28 = smov 0  }
   0x5 LB: > { %5487 = sst [smem:[#allocation7_spill]] %s4274_s27  ;;  %s4376_s29 = sadd.s32 4294967295, %s4278_s28   ;;  %s4278_s28 = sphi %s4361_s28, %s5496_s28   ;;  %s4274_s27 = sphi %s4359_s27, %s5493_s27   ;;  %s4270_s26 = sphi %s4357_s26, %s5495_s26   ;;  %s4266_s25 = sphi %s4355_s25, %s5494_s25  }
   0x6   : > { %s3204_s30 = sadd.s32 4294967294, %s4278_s28   ;;  %s4380_s14 = sadd.s32 1, %s4278_s28  }
   0x7   : > { %s311_s15 = sadd.s32 1, %s4274_s27  ;;  %s308_s16 = ssub.s32 %s4278_s28, %s4380_s14 }
   0x8   : > { %p321_p0 = scmp.ne.s32.totalorder %s4274_s27, %s4270_s26  ;;  %p309_p1 = scmp.eq.s32.totalorder %s308_s16, 0 }
   0x9   : > { %p322_p2 = scmp.eq.s32.totalorder %s4376_s29, 1  ;;  %p327_p3 = scmp.ne.s32.totalorder %s4270_s26, %s4266_s25 }
   0xa   : > { %p328_p4 = scmp.eq.s32.totalorder %s3204_s30, 1  ;;  %p3207_p7 = scmp.ge.s32.totalorder %s4278_s28, 1 }
   0xb   : > { %s4391_s17 = scalar_select %p309_p1, %s4274_s27, %s311_s15  }
   0xc   : > { %p4393_p5 = por %p322_p2, %p321_p0  ;;  %p4397_p6 = por %p328_p4, %p327_p3 }
   0xd   : > { %5488 = sst [smem:[#allocation8_spill]] %s4391_s17  ;;  %p390_p8 = scmp.lt.s32.totalorder %s4278_s28, 3 }
   0xf   : > { %p391_p9 = pnand %p3207_p7, %p390_p8 }
  0x10   : > { %v4043_v0 = vld [vmem:[%s5472_s1 + $0x24] ss:$8 sps:$4 sm:$0xff] (!%p391_p9)   ;;  %vm483_vm0 = vcmask (!%p391_p9), 1045504   ;;  %v4045_v1 = vld [vmem:[%s5472_s1 + $0x20] ss:$8 sps:$4 sm:$0xff] (!%p391_p9)   ;;  %v4280_v2 = vmov (!%p391_p9), 0  }
  0x11   : > { %394 = sbr.rel (%p391_p9) target bundleno = 2735 (0xaaf), region = 72  ;;  %522 = vmatprep.mubr.bf16.mxu0 (!%p391_p9), %v4280_v2  ;;  %p433_p10 = scmp.lt.s32.totalorder (!%p391_p9), %s4376_s29, 1  ;;  %490 = vmatprep.subr.bf16.mxu0 (!%p391_p9), %v4043_v0  ;;  %v4046_v3 = vld [vmem:[%s5472_s1 + $0x34] ss:$8 sps:$4 sm:$0x3f] (!%p391_p9)   ;;  %vm476_vm1 = vcmask (!%p391_p9), 228352  }
  0x12   : > { %v4048_v4 = vld [vmem:[%s5472_s1 + $0x30] ss:$8 sps:$4 sm:$0x3f] (!%p391_p9)   ;;  %491 = vmatpush1.bf16.msra.mxu0 (!%p391_p9), %v4045_v1  ;;  %v4051_v6 = vld [vmem:[%s5472_s1 + $0x4] ss:$8 sps:$4 sm:$0xff] (!%p391_p9)   ;;  %s5491_s0 = sld [smem:[#allocation9_spill]] (!%p391_p9) }
  0x13   : > { %3218 = vmatprep.subr.msk.bf16.mxu0 (!%p391_p9), %vm483_vm0, %v4046_v3  ;;  %v485_v5 = vsel (!%p391_p9), %vm483_vm0, %v4048_v4, 0  ;;  %v4049_v9 = vld [vmem:[%s5472_s1] ss:$8 sps:$4 sm:$0xff] (!%p391_p9)   ;;  %v4052_v11 = vld [vmem:[%s5472_s1 + $0x14] ss:$8 sps:$4 sm:$0x3f] (!%p391_p9)  }
  0x14   : > { %v4054_v12 = vld [vmem:[%s5472_s1 + $0x10] ss:$8 sps:$4 sm:$0x3f] (!%p391_p9)   ;;  %v4057_v15 = vld [vmem:[%s5472_s1 + $0x44] ss:$8 sps:$4 sm:$0xff] (!%p391_p9)   ;;  %v4281_v51 = vmov (!%p391_p9), 0.0  }
  0x15   : > { %v566_v14 = vsel (!%p391_p9), %vm483_vm0, %v4054_v12, 0  ;;  %v4055_v19 = vld [vmem:[%s5472_s1 + $0x40] ss:$8 sps:$4 sm:$0xff] (!%p391_p9)   ;;  %v4058_v21 = vld [vmem:[%s5472_s1 + $0x54] ss:$8 sps:$4 sm:$0x3f] (!%p391_p9)   ;;  %986 = vmatprep.mubr.f32.mxu1 (!%p391_p9), %v4281_v51 }
  0x16   : > { %493 = vmatpush1.bf16.msra.mxu0 (!%p391_p9), %v485_v5  ;;  %v4060_v22 = vld [vmem:[%s5472_s1 + $0x50] ss:$8 sps:$4 sm:$0x3f] (!%p391_p9)   ;;  %v4063_v24 = vld [vmem:[%s5472_s1 + $0x64] ss:$8 sps:$4 sm:$0xff] (!%p391_p9)   ;;  %vm915_vm2 = vcmask (!%p391_p9), 195584  }
  0x17   : > { %571 = vmatprep.subr.bf16.mxu0 (!%p391_p9), %v4051_v6  ;;  %v657_v25 = vsel (!%p391_p9), %vm483_vm0, %v4060_v22, 0  ;;  %v4066_v29 = vld [vmem:[%s5472_s1 + $0x70] ss:$8 sps:$4 sm:$0x3f] (!%p391_p9)   ;;  %v4061_v30 = vld [vmem:[%s5472_s1 + $0x60] ss:$8 sps:$4 sm:$0xff] (!%p391_p9)  }
  0x18   : > { %s434_s20 = scalar_select %p433_p10, %s4376_s29, 1  ;;  %v4064_v32 = vld [vmem:[%s5472_s1 + $0x74] ss:$8 sps:$4 sm:$0x3f]   ;;  %v754_v34 = vsel %vm483_vm0, %v4066_v29, 0  ;;  %v999_v59 = vld [vmem:[%s5474_s3] sm:$0xff] }
  0x19   : > { %v4069_v35 = vld [vmem:[%s5472_s1 + $0x84] ss:$8 sps:$4 sm:$0xff]   ;;  %v4067_v39 = vld [vmem:[%s5472_s1 + $0x80] ss:$8 sps:$4 sm:$0xff]   ;;  %v3297_v63 = vld [vmem:[%s5473_s2 + $0x10] sm:$0xff]  ;;  %vm1029_vm3 = vcmask 916480  }
  0x1a   : > { %s3546_s23 = sshll.u32 %s434_s20, 5  ;;  %v4070_v41 = vld [vmem:[%s5472_s1 + $0x94] ss:$8 sps:$4 sm:$0x3f]   ;;  %v1000_v60 = vld [vmem:[%s5474_s3 + $0x8] sm:$0xff]  ;;  %v913_v62 = vld [vmem:[%s5473_s2] sm:$0xff] }
  0x1b   : > { %s4426_s24 = scalar_lea.vmem %s5491_s0, %s3546_s23  ;;  %v4072_v42 = vld [vmem:[%s5472_s1 + $0x90] ss:$8 sps:$4 sm:$0x3f]   ;;  %v3649_v3 = vpack.c.bf16 %v1000_v60, %v999_v59  ;;  %v914_v6 = vld [vmem:[%s5473_s2 + $0x8] sm:$0xf]  ;;  %v1011_v22 = vld [vmem:[%s5474_s3 + $0x60] sm:$0xff] }
  0x1c   : > { %v448_v7 = vld [vmem:[%s4426_s24 + $0x1] sm:$0xff]  ;;  %v449_v8 = vld [vmem:[%s4426_s24 + $0x9] sm:$0xff]  ;;  %v450_v13 = vld [vmem:[%s4426_s24 + $0x11] sm:$0xff]  ;;  %v851_v44 = vsel %vm483_vm0, %v4072_v42, 0  ;;  %vm1593_vm4 = vcmask 1043456   ;;  %vm1476_vm5 = vcmask 982016  }
  0x1d   : > { %v451_v10 = vpack.c.bf16 %v449_v8, %v448_v7  ;;  %v452_v16 = vpack.c.bf16 %v450_v13, %v450_v13  ;;  %v439_v17 = vld [vmem:[%s4426_s24] sm:$0xff]  ;;  %v440_v18 = vld [vmem:[%s4426_s24 + $0x8] sm:$0xff]  ;;  %v441_v23 = vld [vmem:[%s4426_s24 + $0x10] sm:$0xff]  ;;  %v4282_v8 = vmov 0.0|0.0   ;;  %vm1478_vm6 = vcmask 977920   ;;  %s431_s15 = sand.u32 1, %s4270_s26  }
  0x1e   : > { %v442_v20 = vpack.c.bf16 %v440_v18, %v439_v17  ;;  %v443_v26 = vpack.c.bf16 %v441_v23, %v441_v23  ;;  %v622_v27 = vld [vmem:[%s4426_s24 + $0x2] sm:$0xff]  ;;  %v623_v28 = vld [vmem:[%s4426_s24 + $0xa] sm:$0xff]  ;;  %v624_v33 = vld [vmem:[%s4426_s24 + $0x12] sm:$0xff]  ;;  %vm2202_vm7 = vcmask 64512   ;;  %vm2297_vm8 = vcmask 261120   ;;  %s3543_s16 = sshll.u32 %s4376_s29, 4 }
  0x1f   : > { %3219 = vmatmul.mubr.msk.bf16.vlgmr.msra.gmra.mrb[0].mxu0 %vm476_vm1, %v451_v10  ;;  %v625_v31 = vpack.c.bf16 %v623_v28, %v622_v27  ;;  %v626_v36 = vpack.c.bf16 %v624_v33, %v624_v33  ;;  %v719_v37 = vld [vmem:[%s4426_s24 + $0x3] sm:$0xff]  ;;  %v720_v38 = vld [vmem:[%s4426_s24 + $0xb] sm:$0xff]  ;;  %v721_v43 = vld [vmem:[%s4426_s24 + $0x13] sm:$0xff]  ;;  %vm4283_vm9 = vmmov 0   ;;  %vm2693_vm10 = vcmask 650240   ;;  %s5428_s21 = scalar_lea.hbm %s5484_s13, %s3543_s16  ;;  %s3137_s22 = scalar_lea.sflag [#allocation5], %s431_s15 }
  0x20   : > { %532 = vmatprep.mubr.bf16.mxu0 %v4280_v2  ;;  %572 = vmatpush1.bf16.msra.mxu0 %v4049_v9  ;;  %v722_v40 = vpack.c.bf16 %v720_v38, %v719_v37  ;;  %v723_v45 = vpack.c.bf16 %v721_v43, %v721_v43  ;;  %v816_v46 = vld [vmem:[%s4426_s24 + $0x4] sm:$0xff]  ;;  %v817_v47 = vld [vmem:[%s4426_s24 + $0xc] sm:$0xff]  ;;  %v818_v49 = vld [vmem:[%s4426_s24 + $0x14] sm:$0xff]  ;;  %vm2750_vm11 = vcmask 654336   ;;  %vm3078_vm12 = vcmask 1040384   ;;  %s432_s24 = scalar_lea.vmem [#allocation4], %s431_s15 }
  0x21   : > { %3225 = vmatprep.subr.msk.bf16.mxu0 %vm483_vm0, %v4052_v11  ;;  %v819_v48 = vpack.c.bf16 %v817_v47, %v816_v46  ;;  %v820_v50 = vpack.c.bf16 %v818_v49, %v818_v49  ;;  %v1001_v4 = vld [vmem:[%s5474_s3 + $0x10] sm:$0xff]  ;;  %v1002_v5 = vld [vmem:[%s5474_s3 + $0x18] sm:$0xff]  ;;  %v1003_v10 = vld [vmem:[%s5474_s3 + $0x20] sm:$0xff]  ;;  %vm3074_vm13 = vcmask 408576   ;;  %vm3122_vm14 = vcmask 73728   ;;  %s3149_s20 = sshll.u32 %s432_s24, 4  ;;  %s5430_s20 = int_to_ptr.vmem [resolvable:$true] %s3149_s20 }
  0x22   : > { %v3298_v7 = vld [vmem:[%s5473_s2 + $0x18] sm:$0xf]  ;;  %v3652_v9 = vpack.c.bf16 %v1002_v5, %v1001_v4  ;;  %v1004_v11 = vld [vmem:[%s5474_s3 + $0x28] sm:$0xff]  ;;  %v1005_v13 = vld [vmem:[%s5474_s3 + $0x30] sm:$0xff]  ;;  %s4216_s23 = scalar_lea.vmem %s5430_s20, 16  ;;  %s4284_s29 = smov [#allocation4]  }
  0x23   : > { %v3655_v12 = vpack.c.bf16 %v1004_v11, %v1003_v10  ;;  %v1008_v17 = vld [vmem:[%s5474_s3 + $0x48] sm:$0xff]  ;;  %v1015_v28 = vld [vmem:[%s5474_s3 + $0x80] sm:$0xff]  ;;  %v1021_v37 = vld [vmem:[%s5474_s3 + $0xb0] sm:$0xff]  ;;  %p4217_p11 = scmp.ne.s32.totalorder %s5430_s20, %s4216_s23  ;;  %s4220_s30 = sshll.u32 %s4284_s29, 4  ;;  %s4221_s30 = int_to_ptr.vmem [resolvable:$false] %s4220_s30 }
  0x24   : > { %574 = vmatpush1.bf16.msra.mxu0 %v566_v14  ;;  %v1006_v14 = vld [vmem:[%s5474_s3 + $0x38] sm:$0xff]  ;;  %v1012_v23 = vld [vmem:[%s5474_s3 + $0x68] sm:$0xff]  ;;  %v1025_v43 = vld [vmem:[%s5474_s3 + $0xd0] sm:$0xff]  ;;  %s4222_s0 = scalar_lea.vmem %s4221_s30, 32  ;;  %p4223_p0 = scmp.lt.s32.totalorder %s5430_s20, %s4221_s30 }
  0x25   : > { %662 = vmatprep.subr.bf16.mxu0 %v4057_v15  ;;  %v3658_v15 = vpack.c.bf16 %v1006_v14, %v1005_v13  ;;  %v1016_v29 = vld [vmem:[%s5474_s3 + $0x88] sm:$0xff]  ;;  %v1022_v38 = vld [vmem:[%s5474_s3 + $0xb8] sm:$0xff]  ;;  %v1027_v46 = vld [vmem:[%s5474_s3 + $0xe0] sm:$0xff]  ;;  %p4218_p12 = pnand %p4217_p11, %p4393_p5  ;;  %p4224_p1 = scmp.lt.s32.totalorder %s4222_s0, %s4216_s23 }
  0x26   : > { %v1028_v47 = vld [vmem:[%s5474_s3 + $0xe8] sm:$0xff]  ;;  %v3265_v49 = vld [vmem:[%s5474_s3 + $0xf0] sm:$0xff]  ;;  %v3271_v4 = vld [vmem:[%s5474_s3 + $0x120] sm:$0xff] }
  0x27   : > { %3220 = vmatmul.mubr.msk.bf16.gmra.mrb[4].mxu0 %vm476_vm1, %v452_v16  ;;  %v1007_v16 = vld [vmem:[%s5474_s3 + $0x40] sm:$0xff]  ;;  %v3272_v5 = vld [vmem:[%s5474_s3 + $0x128] sm:$0xff]  ;;  %v3277_v14 = vld [vmem:[%s5474_s3 + $0x150] sm:$0xff]  ;;  %p4219_p13 = pneg %p4218_p12  ;;  %p4225_p2 = por %p4224_p1, %p4223_p0 }
  0x28   : > { %603 = vmatprep.mubr.bf16.mxu0 %v4280_v2  ;;  %v3661_v18 = vpack.c.bf16 %v1008_v17, %v1007_v16  ;;  %v3275_v11 = vld [vmem:[%s5474_s3 + $0x140] sm:$0xff] }
  0x29   : > { %v3279_v17 = vld [vmem:[%s5474_s3 + $0x160] sm:$0xff]  ;;  %p4226_p3 = pnand %p4225_p2, %p4219_p13 }
  0x2f   : > { %3226 = vmatmul.mubr.msk.bf16.vlgmr.msra.gmra.mrb[0].mxu0 %vm476_vm1, %v442_v20  ;;  %v1010_v20 = vld [vmem:[%s5474_s3 + $0x58] sm:$0xff] }
  0x30   : > { %613 = vmatprep.mubr.bf16.mxu0 %v4280_v2  ;;  %663 = vmatpush1.bf16.msra.mxu0 %v4055_v19  ;;  %v1009_v19 = vld [vmem:[%s5474_s3 + $0x50] sm:$0xff] }
  0x31   : > { %3236 = vmatprep.subr.msk.bf16.mxu0 %vm483_vm0, %v4058_v21  ;;  %v3664_v21 = vpack.c.bf16 %v1010_v20, %v1009_v19  ;;  %v3281_v20 = vld [vmem:[%s5474_s3 + $0x170] sm:$0xff] }
  0x34   : > { %665 = vmatpush1.bf16.msra.mxu0 %v657_v25  ;;  %v1013_v25 = vld [vmem:[%s5474_s3 + $0x70] sm:$0xff] }
  0x35   : > { %759 = vmatprep.subr.bf16.mxu0 %v4063_v24  ;;  %v3667_v24 = vpack.c.bf16 %v1012_v23, %v1011_v22  ;;  %v3283_v23 = vld [vmem:[%s5474_s3 + $0x180] sm:$0xff] }
  0x37   : > { %3227 = vmatmul.mubr.msk.bf16.gmra.mrb[4].mxu0 %vm476_vm1, %v443_v26  ;;  %v1014_v26 = vld [vmem:[%s5474_s3 + $0x78] sm:$0xff] }
  0x38   : > { %694 = vmatprep.mubr.bf16.mxu0 %v4280_v2  ;;  %v3670_v27 = vpack.c.bf16 %v1014_v26, %v1013_v25  ;;  %v3285_v26 = vld [vmem:[%s5474_s3 + $0x190] sm:$0xff] }
  0x3f   : > { %3237 = vmatmul.mubr.msk.bf16.vlgmr.msra.gmra.mrb[0].mxu0 %vm476_vm1, %v625_v31  ;;  %v1017_v31 = vld [vmem:[%s5474_s3 + $0x90] sm:$0xff] }
  0x40   : > { %704 = vmatprep.mubr.bf16.mxu0 %v4280_v2  ;;  %760 = vmatpush1.bf16.msra.mxu0 %v4061_v30  ;;  %v3673_v30 = vpack.c.bf16 %v1016_v29, %v1015_v28  ;;  %v3287_v29 = vld [vmem:[%s5474_s3 + $0x1a0] sm:$0xff] }
  0x41   : > { %3247 = vmatprep.subr.msk.bf16.mxu0 %vm483_vm0, %v4064_v32  ;;  %v1018_v32 = vld [vmem:[%s5474_s3 + $0x98] sm:$0xff] }
  0x42   : > { %v3676_v33 = vpack.c.bf16 %v1018_v32, %v1017_v31  ;;  %v3289_v32 = vld [vmem:[%s5474_s3 + $0x1b0] sm:$0xff] }
  0x44   : > { %762 = vmatpush1.bf16.msra.mxu0 %v754_v34  ;;  %v1019_v34 = vld [vmem:[%s5474_s3 + $0xa0] sm:$0xff] }
  0x45   : > { %856 = vmatprep.subr.bf16.mxu0 %v4069_v35  ;;  %v1020_v35 = vld [vmem:[%s5474_s3 + $0xa8] sm:$0xff] }
  0x47   : > { %3238 = vmatmul.mubr.msk.bf16.gmra.mrb[4].mxu0 %vm476_vm1, %v626_v36  ;;  %v3679_v36 = vpack.c.bf16 %v1020_v35, %v1019_v34  ;;  %v3291_v35 = vld [vmem:[%s5474_s3 + $0x1c0] sm:$0xff] }
  0x48   : > { %791 = vmatprep.mubr.bf16.mxu0 %v4280_v2 }
  0x4f   : > { %3248 = vmatmul.mubr.msk.bf16.vlgmr.msra.gmra.mrb[0].mxu0 %vm476_vm1, %v722_v40  ;;  %v1023_v40 = vld [vmem:[%s5474_s3 + $0xc0] sm:$0xff] }
  0x50   : > { %801 = vmatprep.mubr.bf16.mxu0 %v4280_v2  ;;  %857 = vmatpush1.bf16.msra.mxu0 %v4067_v39  ;;  %v3682_v39 = vpack.c.bf16 %v1022_v38, %v1021_v37  ;;  %v3293_v38 = vld [vmem:[%s5474_s3 + $0x1d0] sm:$0xff] }
  0x51   : > { %3258 = vmatprep.subr.msk.bf16.mxu0 %vm483_vm0, %v4070_v41  ;;  %v1024_v41 = vld [vmem:[%s5474_s3 + $0xc8] sm:$0xff] }
  0x52   : > { %v3685_v42 = vpack.c.bf16 %v1024_v41, %v1023_v40  ;;  %v4073_v41 = vld [vmem:[%s5476_s5 + $0x78] ss:$8 sps:$4 sm:$0xff]  }
  0x54   : > { %859 = vmatpush1.bf16.msra.mxu0 %v851_v44  ;;  %v1026_v44 = vld [vmem:[%s5474_s3 + $0xd8] sm:$0xff] }
  0x57   : > { %3249 = vmatmul.mubr.msk.bf16.gmra.mrb[4].mxu0 %vm476_vm1, %v723_v45  ;;  %v3688_v45 = vpack.c.bf16 %v1026_v44, %v1025_v43  ;;  %v4078_v43 = vld [vmem:[%s5476_s5 + $0x8c] ss:$8 sps:$4 sm:$0xff]   ;;  %v4076_v44 = vld [vmem:[%s5476_s5 + $0x88] ss:$8 sps:$4 sm:$0xff]  }
  0x58   : > { %888 = vmatprep.mubr.bf16.mxu0 %v4280_v2 }
  0x5f   : > { %3259 = vmatmul.mubr.msk.bf16.vlgmr.msra.gmra.mrb[0].mxu0 %vm476_vm1, %v819_v48  ;;  %v3691_v48 = vpack.c.bf16 %v1028_v47, %v1027_v46  ;;  %v4079_v46 = vld [vmem:[%s5476_s5 + $0x98] ss:$8 sps:$4 sm:$0xff]   ;;  %v4084_v47 = vld [vmem:[%s5476_s5 + $0xac] ss:$8 sps:$4 sm:$0xff]  }
  0x60   : > { %898 = vmatprep.mubr.bf16.mxu0 %v4280_v2 }
  0x67   : > { %3260 = vmatmul.mubr.msk.bf16.gmra.mrb[4].mxu0 %vm476_vm1, %v820_v50  ;;  %v3266_v50 = vld [vmem:[%s5474_s3 + $0xf8] sm:$0xff] }
  0x68   : > { %1290 = vmatprep.mubr.f32.mxu0 %v4281_v51 }
 0x132   : > { %v890_v52 = vpop.f32.mrb[0].mxu0 }
 0x133   : > { %v892_v53 = vpop.f32.mrb[1].mxu0 }
 0x134   : > { %v894_v54 = vpop.f32.mrb[2].mxu0 }
 0x135   : > { %v3646_v55 = vpack.c.bf16 %v894_v54, %v890_v52  ;;  %v896_v56 = vpop.f32.mrb[3].mxu0 }
 0x136   : > { %v3644_v57 = vpack.c.bf16 %v896_v56, %v892_v53  ;;  %v4664_v53 = vpack.c.bf16 %v3266_v50, %v3265_v49  ;;  %v3267_v56 = vld [vmem:[%s5474_s3 + $0x100] sm:$0xff] }
 0x137   : > { %v4087_v49 = vld [vmem:[%s5476_s5 + $0xbc] ss:$8 sps:$4 sm:$0xff]   ;;  %v4085_v50 = vld [vmem:[%s5476_s5 + $0xb8] ss:$8 sps:$4 sm:$0xff]  }
 0x138   : > { %3645 = vmatprep.subr.bf16.mxu1 %v3644_v57  ;;  %3739 = vmatprep.subr.bf16.mxu0 %v3644_v57  ;;  %v3268_v57 = vld [vmem:[%s5474_s3 + $0x108] sm:$0xff] }
 0x139   : > { %3647 = vmatpush1.bf16.msra.mxu1 %v3646_v55  ;;  %3741 = vmatpush1.bf16.msra.mxu0 %v3646_v55  ;;  %v4684_v60 = vpack.c.bf16 %v3268_v57, %v3267_v56  ;;  %v4088_v57 = vld [vmem:[%s5476_s5 + $0xc8] ss:$8 sps:$4 sm:$0xff]  }
 0x13a   : > { %v900_v58 = vpop.f32.mrb[4].mxu0 }
 0x13b   : > { %v902_v61 = vpop.f32.mrb[5].mxu0 }
 0x13c   : > { %v904_v0 = vpop.f32.mrb[6].mxu0  ;;  %926 = vmatprep.subr.mxu1 %v902_v61  ;;  %1230 = vmatprep.subr.mxu0 %v902_v61 }
 0x13d   : > { %v905_v1 = vpop.f32.mrb[7].mxu0  ;;  %927 = vmatpush1.msra.mxu1 %v900_v58  ;;  %1231 = vmatpush1.msra.mxu0 %v900_v58  ;;  %v3270_v0 = vld [vmem:[%s5474_s3 + $0x118] sm:$0xff] }
 0x13e   : > { %3261 = vmatmul.mubr.msk.f32.vlgmr.msra.gmra.mrb[0].mxu1 %vm915_vm2, %v913_v62  ;;  %3299 = vmatmul.mubr.msk.f32.vlgmr.msra.gmra.mrb[8].mxu0 %vm915_vm2, %v3297_v63  ;;  %v3269_v63 = vld [vmem:[%s5474_s3 + $0x110] sm:$0xff] }
 0x13f   : > { %992 = vmatprep.mubr.f32.mxu1 %v4281_v51  ;;  %1296 = vmatprep.mubr.f32.mxu0 %v4281_v51 }
 0x140   : > { %3648 = vmatprep.subr.bf16.mxu1 %v4282_v8  ;;  %3742 = vmatprep.subr.bf16.mxu0 %v4282_v8 }
 0x141   : > { %3650 = vmatpush1.bf16.msra.mxu1 %v3649_v3  ;;  %3744 = vmatpush1.bf16.msra.mxu0 %v3649_v3  ;;  %v4707_v3 = vpack.c.bf16 %v3270_v0, %v3269_v63  ;;  %v4091_v63 = vld [vmem:[%s5476_s5 + $0xd8] ss:$8 sps:$4 sm:$0xff]   ;;  %v3320_v0 = vld [vmem:[%s5476_s5 + $0xe8] sm:$0xff] }
 0x142   : > { %3262 = vmatmul.mubr.msk.f32.gmra.mrb[2].mxu1 %vm915_vm2, %v914_v6  ;;  %3300 = vmatmul.mubr.msk.f32.gmra.mrb[10].mxu0 %vm915_vm2, %v3298_v7  ;;  %v4718_v6 = vpack.c.bf16 %v3272_v5, %v3271_v4  ;;  %v3273_v7 = vld [vmem:[%s5474_s3 + $0x130] sm:$0xff]  ;;  %v4098_v5 = vld [vmem:[%s5476_s5 + $0x4] ss:$8 sps:$4 sm:$0xff]  }
 0x143   : > { %3651 = vmatprep.subr.bf16.mxu1 %v4282_v8  ;;  %3745 = vmatprep.subr.bf16.mxu0 %v4282_v8 }
 0x145   : > { %3653 = vmatpush1.bf16.msra.mxu1 %v3652_v9  ;;  %3747 = vmatpush1.bf16.msra.mxu0 %v3652_v9  ;;  %v3274_v9 = vld [vmem:[%s5474_s3 + $0x138] sm:$0xff] }
 0x146   : > { %3654 = vmatprep.subr.bf16.mxu1 %v4282_v8  ;;  %3748 = vmatprep.subr.bf16.mxu0 %v4282_v8  ;;  %v4728_v10 = vpack.c.bf16 %v3274_v9, %v3273_v7 }
 0x149   : > { %3656 = vmatpush1.bf16.msra.mxu1 %v3655_v12  ;;  %3750 = vmatpush1.bf16.msra.mxu0 %v3655_v12  ;;  %v3276_v12 = vld [vmem:[%s5474_s3 + $0x148] sm:$0xff] }
 0x14a   : > { %3657 = vmatprep.subr.bf16.mxu1 %v4282_v8  ;;  %3751 = vmatprep.subr.bf16.mxu0 %v4282_v8  ;;  %v3709_v13 = vpack.c.bf16 %v3276_v12, %v3275_v11 }
 0x14d   : > { %3659 = vmatpush1.bf16.msra.mxu1 %v3658_v15  ;;  %3753 = vmatpush1.bf16.msra.mxu0 %v3658_v15  ;;  %v3278_v15 = vld [vmem:[%s5474_s3 + $0x158] sm:$0xff] }
 0x14e   : > { %3660 = vmatprep.subr.bf16.mxu1 %v4282_v8  ;;  %3754 = vmatprep.subr.bf16.mxu0 %v4282_v8  ;;  %v3712_v16 = vpack.c.bf16 %v3278_v15, %v3277_v14 }
 0x151   : > { %3662 = vmatpush1.bf16.msra.mxu1 %v3661_v18  ;;  %3756 = vmatpush1.bf16.msra.mxu0 %v3661_v18  ;;  %v3280_v18 = vld [vmem:[%s5474_s3 + $0x168] sm:$0xff] }
 0x152   : > { %3663 = vmatprep.subr.bf16.mxu1 %v4282_v8  ;;  %3757 = vmatprep.subr.bf16.mxu0 %v4282_v8  ;;  %v3715_v19 = vpack.c.bf16 %v3280_v18, %v3279_v17 }
 0x155   : > { %3665 = vmatpush1.bf16.msra.mxu1 %v3664_v21  ;;  %3759 = vmatpush1.bf16.msra.mxu0 %v3664_v21  ;;  %v3282_v21 = vld [vmem:[%s5474_s3 + $0x178] sm:$0xff] }
 0x156   : > { %3666 = vmatprep.subr.bf16.mxu1 %v4282_v8  ;;  %3760 = vmatprep.subr.bf16.mxu0 %v4282_v8  ;;  %v3718_v22 = vpack.c.bf16 %v3282_v21, %v3281_v20 }
 0x159   : > { %3668 = vmatpush1.bf16.msra.mxu1 %v3667_v24  ;;  %3762 = vmatpush1.bf16.msra.mxu0 %v3667_v24  ;;  %v3284_v24 = vld [vmem:[%s5474_s3 + $0x188] sm:$0xff] }
 0x15a   : > { %3669 = vmatprep.subr.bf16.mxu1 %v4282_v8  ;;  %3763 = vmatprep.subr.bf16.mxu0 %v4282_v8  ;;  %v3721_v25 = vpack.c.bf16 %v3284_v24, %v3283_v23 }
 0x15d   : > { %3671 = vmatpush1.bf16.msra.mxu1 %v3670_v27  ;;  %3765 = vmatpush1.bf16.msra.mxu0 %v3670_v27  ;;  %v3286_v27 = vld [vmem:[%s5474_s3 + $0x198] sm:$0xff] }
 0x15e   : > { %3672 = vmatprep.subr.bf16.mxu1 %v4282_v8  ;;  %3766 = vmatprep.subr.bf16.mxu0 %v4282_v8  ;;  %v3724_v28 = vpack.c.bf16 %v3286_v27, %v3285_v26  ;;  %v4096_v26 = vld [vmem:[%s5476_s5] ss:$8 sps:$4 sm:$0xff]  }
 0x161   : > { %3674 = vmatpush1.bf16.msra.mxu1 %v3673_v30  ;;  %3768 = vmatpush1.bf16.msra.mxu0 %v3673_v30  ;;  %v3288_v30 = vld [vmem:[%s5474_s3 + $0x1a8] sm:$0xff] }
 0x162   : > { %3675 = vmatprep.subr.bf16.mxu1 %v4282_v8  ;;  %3769 = vmatprep.subr.bf16.mxu0 %v4282_v8  ;;  %v3727_v31 = vpack.c.bf16 %v3288_v30, %v3287_v29  ;;  %v4101_v29 = vld [vmem:[%s5476_s5 + $0x14] ss:$8 sps:$4 sm:$0xff]   ;;  %v4099_v30 = vld [vmem:[%s5476_s5 + $0x10] ss:$8 sps:$4 sm:$0xff]  }
 0x165   : > { %3677 = vmatpush1.bf16.msra.mxu1 %v3676_v33  ;;  %3771 = vmatpush1.bf16.msra.mxu0 %v3676_v33  ;;  %v3290_v33 = vld [vmem:[%s5474_s3 + $0x1b8] sm:$0xff] }
 0x166   : > { %3678 = vmatprep.subr.bf16.mxu1 %v4282_v8  ;;  %3772 = vmatprep.subr.bf16.mxu0 %v4282_v8  ;;  %v3730_v34 = vpack.c.bf16 %v3290_v33, %v3289_v32  ;;  %v4102_v32 = vld [vmem:[%s5476_s5 + $0x20] ss:$8 sps:$4 sm:$0xff]   ;;  %v4107_v33 = vld [vmem:[%s5476_s5 + $0x34] ss:$8 sps:$4 sm:$0xff]  }
 0x169   : > { %3680 = vmatpush1.bf16.msra.mxu1 %v3679_v36  ;;  %3774 = vmatpush1.bf16.msra.mxu0 %v3679_v36  ;;  %v3292_v36 = vld [vmem:[%s5474_s3 + $0x1c8] sm:$0xff] }
 0x16a   : > { %3681 = vmatprep.subr.bf16.mxu1 %v4282_v8  ;;  %3775 = vmatprep.subr.bf16.mxu0 %v4282_v8  ;;  %v3733_v37 = vpack.c.bf16 %v3292_v36, %v3291_v35  ;;  %v4110_v35 = vld [vmem:[%s5476_s5 + $0x44] ss:$8 sps:$4 sm:$0xff]   ;;  %v4108_v36 = vld [vmem:[%s5476_s5 + $0x40] ss:$8 sps:$4 sm:$0xff]  }
 0x16d   : > { %3683 = vmatpush1.bf16.msra.mxu1 %v3682_v39  ;;  %3777 = vmatpush1.bf16.msra.mxu0 %v3682_v39  ;;  %v3294_v39 = vld [vmem:[%s5474_s3 + $0x1d8] sm:$0xff] }
 0x16e   : > { %3684 = vmatprep.subr.bf16.mxu1 %v4282_v8  ;;  %3778 = vmatprep.subr.bf16.mxu0 %v4282_v8  ;;  %v3736_v40 = vpack.c.bf16 %v3294_v39, %v3293_v38  ;;  %v4111_v38 = vld [vmem:[%s5476_s5 + $0x50] ss:$8 sps:$4 sm:$0xff]   ;;  %v4116_v39 = vld [vmem:[%s5476_s5 + $0x64] ss:$8 sps:$4 sm:$0xff]  }
 0x171   : > { %3686 = vmatpush1.bf16.msra.mxu1 %v3685_v42  ;;  %3780 = vmatpush1.bf16.msra.mxu0 %v3685_v42  ;;  %v4075_v42 = vld [vmem:[%s5476_s5 + $0x7c] ss:$8 sps:$4 sm:$0xff]  }
 0x172   : > { %3687 = vmatprep.subr.bf16.mxu1 %v4282_v8  ;;  %3781 = vmatprep.subr.bf16.mxu0 %v4282_v8 }
 0x175   : > { %3689 = vmatpush1.bf16.msra.mxu1 %v3688_v45  ;;  %3783 = vmatpush1.bf16.msra.mxu0 %v3688_v45  ;;  %v4081_v45 = vld [vmem:[%s5476_s5 + $0x9c] ss:$8 sps:$4 sm:$0xff]  }
 0x176   : > { %3690 = vmatprep.subr.bf16.mxu1 %v4282_v8  ;;  %3784 = vmatprep.subr.bf16.mxu0 %v4282_v8 }
 0x179   : > { %3692 = vmatpush1.bf16.msra.mxu1 %v3691_v48  ;;  %3786 = vmatpush1.bf16.msra.mxu0 %v3691_v48  ;;  %v4082_v48 = vld [vmem:[%s5476_s5 + $0xa8] ss:$8 sps:$4 sm:$0xff]  }
 0x17a   : > { %3693 = vmatprep.subr.bf16.mxu1 %v4282_v8  ;;  %1600 = vmatprep.subr.bf16.mxu0 %v4075_v42 }
 0x211   : > { %v4662_v52 = vpop.f32.mrb[0].mxu1  ;;  %v4666_v54 = vpop.f32.mrb[8].mxu0 }
 0x212   : > { %v990_v55 = vpop.f32.mrb[1].mxu1  ;;  %v4674_v58 = vpop.f32.mrb[9].mxu0 }
 0x213   : > { %3263 = vmatprep.mubr.msk.f32.mxu1 %vm1029_vm3, %v990_v55  ;;  %3301 = vmatprep.mubr.msk.f32.mxu0 %vm1029_vm3, %v4674_v58 }
 0x214   : > { %1101 = vmatmul.mubr.f32.vlgmr.msra.gmra.mrb[4].mxu1 %v4662_v52  ;;  %1374 = vmatmul.mubr.f32.vlgmr.msra.gmra.mrb[12].mxu0 %v4666_v54 }
 0x215   : > { %3695 = vmatpush1.bf16.msra.mxu1 %v4664_v53  ;;  %v4682_v59 = vpop.f32.mrb[2].mxu1  ;;  %v4686_v61 = vpop.f32.mrb[10].mxu0  ;;  %1601 = vmatpush1.bf16.msra.mxu0 %v4073_v41  ;;  %v4114_v41 = vld [vmem:[%s5476_s5 + $0x60] ss:$8 sps:$4 sm:$0xff]  }
 0x216   : > { %v4688_v62 = vpop.f32.mrb[3].mxu1  ;;  %3696 = vmatprep.subr.bf16.mxu1 %v4282_v8  ;;  %v4697_v1 = vpop.f32.mrb[11].mxu0  ;;  %1602 = vmatprep.subr.bf16.mxu0 %v4078_v43 }
 0x217   : > { %3264 = vmatprep.mubr.msk.f32.mxu1 %vm1029_vm3, %v4688_v62  ;;  %3302 = vmatprep.mubr.msk.f32.mxu0 %vm1029_vm3, %v4697_v1 }
 0x218   : > { %1106 = vmatmul.mubr.f32.gmra.mrb[6].mxu1 %v4682_v59  ;;  %1379 = vmatmul.mubr.f32.gmra.mrb[14].mxu0 %v4686_v61 }
 0x219   : > { %3698 = vmatpush1.bf16.msra.mxu1 %v4684_v60  ;;  %3295 = vmatprep.mubr.msk.f32.mxu1 %vm1029_vm3, %v990_v55 }
 0x21a   : > { %3699 = vmatprep.subr.bf16.mxu1 %v4282_v8  ;;  %1632 = vmatprep.mubr.bf16.mxu0 %v4280_v2 }
 0x21b   : > { %1603 = vmatpush1.bf16.msra.mxu0 %v4076_v44 }
 0x21c   : > { %1604 = vmatprep.subr.bf16.mxu0 %v4081_v45  ;;  %v4121_v45 = vld [vmem:[%s5476_s5 + $0xf4] ss:$8 sps:$4 sm:$0xff]  }
 0x21d   : > { %3701 = vmatpush1.bf16.msra.mxu1 %v4707_v3 }
 0x21e   : > { %3702 = vmatprep.subr.bf16.mxu1 %v4282_v8 }
 0x21f   : > { %1605 = vmatpush1.bf16.msra.mxu0 %v4079_v46 }
 0x220   : > { %1606 = vmatprep.subr.bf16.mxu0 %v4084_v47  ;;  %v4119_v47 = vld [vmem:[%s5476_s5 + $0xf0] ss:$8 sps:$4 sm:$0xff]  }
 0x221   : > { %3704 = vmatpush1.bf16.msra.mxu1 %v4718_v6 }
 0x222   : > { %3705 = vmatprep.subr.bf16.mxu1 %v4282_v8 }
 0x223   : > { %1607 = vmatpush1.bf16.msra.mxu0 %v4082_v48 }
 0x224   : > { %1608 = vmatprep.subr.bf16.mxu0 %v4087_v49  ;;  %v4124_v49 = vld [vmem:[%s5476_s5 + $0x104] ss:$8 sps:$4 sm:$0xff]  }
 0x225   : > { %3707 = vmatpush1.bf16.msra.mxu1 %v4728_v10 }
 0x226   : > { %3708 = vmatprep.subr.bf16.mxu1 %v4282_v8 }
 0x227   : > { %1609 = vmatpush1.bf16.msra.mxu0 %v4085_v50  ;;  %v4122_v50 = vld [vmem:[%s5476_s5 + $0x100] ss:$8 sps:$4 sm:$0xff]  }
 0x229   : > { %3710 = vmatpush1.bf16.msra.mxu1 %v3709_v13 }
 0x22a   : > { %3711 = vmatprep.subr.bf16.mxu1 %v4282_v8 }
 0x22d   : > { %3713 = vmatpush1.bf16.msra.mxu1 %v3712_v16 }
 0x22e   : > { %3714 = vmatprep.subr.bf16.mxu1 %v4282_v8 }
 0x231   : > { %3716 = vmatpush1.bf16.msra.mxu1 %v3715_v19 }
 0x232   : > { %3717 = vmatprep.subr.bf16.mxu1 %v4282_v8 }
 0x235   : > { %3719 = vmatpush1.bf16.msra.mxu1 %v3718_v22 }
 0x236   : > { %3720 = vmatprep.subr.bf16.mxu1 %v4282_v8 }
 0x239   : > { %3722 = vmatpush1.bf16.msra.mxu1 %v3721_v25 }
 0x23a   : > { %3723 = vmatprep.subr.bf16.mxu1 %v4282_v8 }
 0x23d   : > { %3725 = vmatpush1.bf16.msra.mxu1 %v3724_v28 }
 0x23e   : > { %3726 = vmatprep.subr.bf16.mxu1 %v4282_v8 }
 0x241   : > { %3728 = vmatpush1.bf16.msra.mxu1 %v3727_v31 }
 0x242   : > { %3729 = vmatprep.subr.bf16.mxu1 %v4282_v8 }
 0x245   : > { %3731 = vmatpush1.bf16.msra.mxu1 %v3730_v34 }
 0x246   : > { %3732 = vmatprep.subr.bf16.mxu1 %v4282_v8 }
 0x249   : > { %3734 = vmatpush1.bf16.msra.mxu1 %v3733_v37 }
 0x24a   : > { %3735 = vmatprep.subr.bf16.mxu1 %v4282_v8 }
 0x24d   : > { %3737 = vmatpush1.bf16.msra.mxu1 %v3736_v40 }
 0x24e   : > { %3787 = vmatprep.subr.bf16.mxu1 %v4282_v8 }
 0x250   : > { %1207 = vmatmul.mubr.f32.vlgmr.msra.gmra.mrb[8].mxu1 %v4662_v52 }
 0x251   : > { %3296 = vmatprep.mubr.msk.f32.mxu1 %vm1029_vm3, %v4688_v62  ;;  %3789 = vmatpush1.bf16.msra.mxu1 %v4664_v53 }
 0x252   : > { %3790 = vmatprep.subr.bf16.mxu1 %v4282_v8 }
 0x254   : > { %1212 = vmatmul.mubr.f32.gmra.mrb[10].mxu1 %v4682_v59 }
 0x255   : > { %3792 = vmatpush1.bf16.msra.mxu1 %v4684_v60  ;;  %3303 = vmatprep.mubr.msk.f32.mxu1 %vm1029_vm3, %v4674_v58  ;;  %v4093_v60 = vld [vmem:[%s5476_s5 + $0xdc] ss:$8 sps:$4 sm:$0xff]  }
 0x256   : > { %3793 = vmatprep.subr.bf16.mxu1 %v4282_v8 }
 0x259   : > { %3795 = vmatpush1.bf16.msra.mxu1 %v4707_v3  ;;  %v3335_v3 = vcombine.low %v3320_v0, %v3320_v0 }
 0x25a   : > { %3796 = vmatprep.subr.bf16.mxu1 %v4282_v8 }
 0x25b   : > { %v1595_v4 = vsel %vm1593_vm4, %v3335_v3, 0  ;;  %v4144_v3 = vld [vmem:[%s5476_s5 + $0x16c] ss:$8 sps:$4 sm:$0xff]  }
 0x25d   : > { %3798 = vmatpush1.bf16.msra.mxu1 %v4718_v6 }
 0x25e   : > { %3799 = vmatprep.subr.bf16.mxu1 %v4282_v8 }
 0x261   : > { %3801 = vmatpush1.bf16.msra.mxu1 %v4728_v10 }
 0x262   : > { %3802 = vmatprep.subr.bf16.mxu1 %v4282_v8 }
 0x265   : > { %3804 = vmatpush1.bf16.msra.mxu1 %v3709_v13 }
 0x266   : > { %3805 = vmatprep.subr.bf16.mxu1 %v4282_v8 }
 0x269   : > { %3807 = vmatpush1.bf16.msra.mxu1 %v3712_v16  ;;  %v3305_v16 = vld [vmem:[%s5475_s4] ss:$0 sm:$0xff] }
 0x26a   : > { %3808 = vmatprep.subr.bf16.mxu1 %v4282_v8 }
 0x26d   : > { %3810 = vmatpush1.bf16.msra.mxu1 %v3715_v19 }
 0x26e   : > { %3811 = vmatprep.subr.bf16.mxu1 %v4282_v8 }
 0x271   : > { %3813 = vmatpush1.bf16.msra.mxu1 %v3718_v22 }
 0x272   : > { %3814 = vmatprep.subr.bf16.mxu1 %v4282_v8 }
 0x275   : > { %3816 = vmatpush1.bf16.msra.mxu1 %v3721_v25 }
 0x276   : > { %3817 = vmatprep.subr.bf16.mxu1 %v4282_v8 }
 0x279   : > { %3819 = vmatpush1.bf16.msra.mxu1 %v3724_v28 }
 0x27a   : > { %3820 = vmatprep.subr.bf16.mxu1 %v4282_v8 }
 0x27d   : > { %3822 = vmatpush1.bf16.msra.mxu1 %v3727_v31  ;;  %v4104_v31 = vld [vmem:[%s5476_s5 + $0x24] ss:$8 sps:$4 sm:$0xff]  }
 0x27e   : > { %3823 = vmatprep.subr.bf16.mxu1 %v4282_v8 }
 0x281   : > { %3825 = vmatpush1.bf16.msra.mxu1 %v3730_v34  ;;  %v4105_v34 = vld [vmem:[%s5476_s5 + $0x30] ss:$8 sps:$4 sm:$0xff]  }
 0x282   : > { %3826 = vmatprep.subr.bf16.mxu1 %v4282_v8 }
 0x285   : > { %3828 = vmatpush1.bf16.msra.mxu1 %v3733_v37  ;;  %v4113_v37 = vld [vmem:[%s5476_s5 + $0x54] ss:$8 sps:$4 sm:$0xff]  }
 0x286   : > { %3829 = vmatprep.subr.bf16.mxu1 %v4282_v8 }
 0x289   : > { %3831 = vmatpush1.bf16.msra.mxu1 %v3736_v40  ;;  %v1496_v40 = vld [vmem:[%s5476_s5 + $0x70] sm:$0xff] }
 0x28a   : > { %v3354_v42 = vcombine.high %v1496_v40, %v1496_v40  ;;  %v3353_v43 = vcombine.low %v1496_v40, %v1496_v40 }
 0x28c   : > { %1449 = vmatmul.mubr.f32.vlgmr.msra.gmra.mrb[12].mxu1 %v4666_v54  ;;  %v4090_v54 = vld [vmem:[%s5476_s5 + $0xcc] ss:$8 sps:$4 sm:$0xff]   ;;  %v1720_v44 = vsel %vm1593_vm4, %v3353_v43, 0 }
 0x28d   : > { %3304 = vmatprep.mubr.msk.f32.mxu1 %vm1029_vm3, %v4697_v1  ;;  %1610 = vmatprep.subr.bf16.mxu0 %v4090_v54  ;;  %v3336_v1 = vcombine.high %v3320_v0, %v3320_v0  ;;  %v4130_v54 = vld [vmem:[%s5476_s5 + $0x124] ss:$8 sps:$4 sm:$0xff]  }
 0x28e   : > { %1611 = vmatpush1.bf16.msra.mxu0 %v4088_v57  ;;  %v4131_v57 = vld [vmem:[%s5476_s5 + $0x130] ss:$8 sps:$4 sm:$0xff]  }
 0x28f   : > { %1612 = vmatprep.subr.bf16.mxu0 %v4093_v60  ;;  %v4139_v60 = vld [vmem:[%s5476_s5 + $0x154] ss:$8 sps:$4 sm:$0xff]  }
 0x290   : > { %1454 = vmatmul.mubr.f32.gmra.mrb[14].mxu1 %v4686_v61 }
 0x291   : > { %2270 = vmatprep.mubr.f32.mxu1 %v4281_v51 }
 0x292   : > { %1613 = vmatpush1.bf16.msra.mxu0 %v4091_v63 }
 0x293   : > { %3337 = vmatprep.subr.msk.bf16.mxu0 %vm1593_vm4, %v3336_v1 }
 0x296   : > { %1615 = vmatpush1.bf16.msra.mxu0 %v1595_v4 }
 0x297   : > { %1725 = vmatprep.subr.bf16.mxu0 %v4098_v5  ;;  %v4142_v5 = vld [vmem:[%s5476_s5 + $0x168] ss:$8 sps:$4 sm:$0xff]  }
 0x2e7   : > { %v1102_v52 = vpop.f32.mrb[4].mxu1  ;;  %v1375_v53 = vpop.f32.mrb[12].mxu0 }
 0x2e8   : > { %v1104_v55 = vpop.f32.mrb[5].mxu1  ;;  %v1377_v56 = vpop.f32.mrb[13].mxu0 }
 0x2e9   : > { %v4128_v55 = vld [vmem:[%s5476_s5 + $0x120] ss:$8 sps:$4 sm:$0xff]   ;;  %v4133_v56 = vld [vmem:[%s5476_s5 + $0x134] ss:$8 sps:$4 sm:$0xff]  }
 0x2eb   : > { %v1107_v58 = vpop.f32.mrb[6].mxu1  ;;  %v1380_v59 = vpop.f32.mrb[14].mxu0 }
 0x2ec   : > { %v1109_v61 = vpop.f32.mrb[7].mxu1  ;;  %v1382_v62 = vpop.f32.mrb[15].mxu0 }
 0x2ed   : > { %v3371_v61 = vld [vmem:[%s5476_s5 + $0x160] sm:$0xff]  ;;  %v4137_v62 = vld [vmem:[%s5476_s5 + $0x150] ss:$8 sps:$4 sm:$0xff]  }
 0x2ee   : > { %v3387_v63 = vcombine.high %v3371_v61, %v3371_v61  ;;  %v3386_v0 = vcombine.low %v3371_v61, %v3371_v61  ;;  %v2284_v61 = vld [vmem:[%s5478_s7 + $0x38] sm:$0xff] }
 0x2f0   : > { %v1863_v1 = vsel %vm1593_vm4, %v3386_v0, 0  ;;  %v2286_v0 = vld [vmem:[%s5478_s7 + $0x48] sm:$0xff] }
 0x323   : > { %v1208_v6 = vpop.f32.mrb[8].mxu1 }
 0x324   : > { %v1459_v7 = vmax.f32 %v1102_v52, %v1208_v6  ;;  %v1210_v9 = vpop.f32.mrb[9].mxu1  ;;  %v4127_v52 = vld [vmem:[%s5476_s5 + $0x114] ss:$8 sps:$4 sm:$0xff]  }
 0x325   : > { %v4145_v9 = vld [vmem:[%s5476_s5 + $0x178] ss:$8 sps:$4 sm:$0xff]  }
 0x327   : > { %v1213_v10 = vpop.f32.mrb[10].mxu1 }
 0x328   : > { %v1460_v11 = vmax.f32 %v1107_v58, %v1213_v10  ;;  %v1215_v12 = vpop.f32.mrb[11].mxu1  ;;  %v4136_v58 = vld [vmem:[%s5476_s5 + $0x144] ss:$8 sps:$4 sm:$0xff]  }
 0x329   : > { %v4150_v10 = vld [vmem:[%s5476_s5 + $0x18c] ss:$8 sps:$4 sm:$0xff]   ;;  %v4153_v12 = vld [vmem:[%s5476_s5 + $0x19c] ss:$8 sps:$4 sm:$0xff]  }
 0x35f   : > { %v1450_v13 = vpop.f32.mrb[12].mxu1 }
 0x360   : > { %v1461_v14 = vmax.f32 %v1375_v53, %v1450_v13  ;;  %v1452_v15 = vpop.f32.mrb[13].mxu1  ;;  %v4125_v53 = vld [vmem:[%s5476_s5 + $0x110] ss:$8 sps:$4 sm:$0xff]  }
 0x361   : > { %v4151_v13 = vld [vmem:[%s5476_s5 + $0x198] ss:$8 sps:$4 sm:$0xff]   ;;  %v4154_v15 = vld [vmem:[%s5476_s5 + $0x1a8] ss:$8 sps:$4 sm:$0xff]  }
 0x362   : > { %v1463_v17 = vmax.f32 %v1459_v7, %v1461_v14  ;;  %v4147_v7 = vld [vmem:[%s5476_s5 + $0x17c] ss:$8 sps:$4 sm:$0xff]   ;;  %v4156_v14 = vld [vmem:[%s5476_s5 + $0x1ac] ss:$8 sps:$4 sm:$0xff]  }
 0x363   : > { %v1455_v18 = vpop.f32.mrb[14].mxu1 }
 0x364   : > { %v1472_v19 = vadd.f32 %v3305_v16, %v1463_v17  ;;  %v1462_v20 = vmax.f32 %v1380_v59, %v1455_v18  ;;  %v1457_v21 = vpop.f32.mrb[15].mxu1  ;;  %v4134_v59 = vld [vmem:[%s5476_s5 + $0x140] ss:$8 sps:$4 sm:$0xff]   ;;  %v4162_v18 = vld [vmem:[%s5476_s5 + $0x1cc] ss:$8 sps:$4 sm:$0xff]  }
 0x365   : > { %v4157_v17 = vld [vmem:[%s5476_s5 + $0x1b8] ss:$8 sps:$4 sm:$0xff]  }
 0x366   : > { %v1474_v22 = vmax.f32 %v1472_v19, 0.0  ;;  %v1464_v23 = vmax.f32 %v1460_v11, %v1462_v20  ;;  %v4148_v11 = vld [vmem:[%s5476_s5 + $0x188] ss:$8 sps:$4 sm:$0xff]   ;;  %v3404_v19 = vld [vmem:[%s5476_s5 + $0x1d8] sm:$0xff] }
 0x367   : > { %v4160_v20 = vld [vmem:[%s5476_s5 + $0x1c8] ss:$8 sps:$4 sm:$0xff]   ;;  %v3420_v21 = vcombine.high %v3404_v19, %v3404_v19 }
 0x368   : > { %1477 = vst.msk [vmem:[#allocation2] sm:$0xff] %vm1476_vm5, %v1474_v22  ;;  %v1473_v24 = vadd.f32 %v3305_v16, %v1464_v23  ;;  %v4159_v16 = vld [vmem:[%s5476_s5 + $0x1bc] ss:$8 sps:$4 sm:$0xff]   ;;  %v3419_v22 = vcombine.low %v3404_v19, %v3404_v19 }
 0x369   : > { %v3458_v19 = vld [vmem:[%s5478_s7 + $0xa0] sm:$0xff] }
 0x36a   : > { %v1475_v25 = vmax.f32 %v1473_v24, 0.0  ;;  %v2008_v23 = vsel %vm1593_vm4, %v3419_v22, 0  ;;  %v4167_v24 = vld [vmem:[%s5476_s5 + $0x1e4] ss:$8 sps:$4 sm:$0xff]   ;;  %v3460_v22 = vld [vmem:[%s5478_s7 + $0xb0] sm:$0xff] }
 0x36c   : > { %1479 = vst.msk [vmem:[#allocation2 + $0x8] sm:$0xf] %vm1478_vm6, %v1475_v25 }
 0x36f   : > { %v1480_v46 = vld [vmem:[#allocation2] sm:$0xff] }
 0x370   : > { %v1481_v48 = vpack.c.bf16 %v1480_v46, %v1480_v46  ;;  %v2278_v46 = vld [vmem:[%s5478_s7 + $0x8] sm:$0xff] }
 0x373   : > { %v1497_v27 = vld [vmem:[#allocation2 + $0x1] sm:$0xff] }
 0x374   : > { %v1498_v28 = vpack.c.bf16 %v1497_v27, %v1497_v27  ;;  %v1766_v4 = vld [vmem:[#allocation2 + $0x2] sm:$0xff] }
 0x375   : > { %v1767_v6 = vpack.c.bf16 %v1766_v4, %v1766_v4  ;;  %v1911_v25 = vld [vmem:[#allocation2 + $0x3] sm:$0xff]  ;;  %v2288_v4 = vld [vmem:[%s5478_s7 + $0x58] sm:$0xff] }
 0x376   : > { %3338 = vmatmul.mubr.msk.bf16.vlgmr.msra.gmra.mrb[16].mxu0 %vm1476_vm5, %v1498_v28  ;;  %v1912_v27 = vpack.c.bf16 %v1911_v25, %v1911_v25  ;;  %v4170_v28 = vld [vmem:[%s5476_s5 + $0x1f4] ss:$8 sps:$4 sm:$0xff]   ;;  %v2056_v43 = vld [vmem:[#allocation2 + $0x4] sm:$0xff] }
 0x377   : > { %1726 = vmatpush1.bf16.msra.mxu0 %v4096_v26  ;;  %1757 = vmatprep.mubr.bf16.mxu0 %v4280_v2  ;;  %v4165_v26 = vld [vmem:[%s5476_s5 + $0x1e0] ss:$8 sps:$4 sm:$0xff]  }
 0x378   : > { %1727 = vmatprep.subr.bf16.mxu0 %v4101_v29  ;;  %v4168_v29 = vld [vmem:[%s5476_s5 + $0x1f0] ss:$8 sps:$4 sm:$0xff]   ;;  %v3462_v25 = vld [vmem:[%s5478_s7 + $0xc0] sm:$0xff] }
 0x37b   : > { %1728 = vmatpush1.bf16.msra.mxu0 %v4099_v30  ;;  %v4173_v30 = vld [vmem:[%s5476_s5 + $0x204] ss:$8 sps:$4 sm:$0xff]  }
 0x37c   : > { %1729 = vmatprep.subr.bf16.mxu0 %v4104_v31  ;;  %v4171_v31 = vld [vmem:[%s5476_s5 + $0x200] ss:$8 sps:$4 sm:$0xff]  }
 0x37f   : > { %1730 = vmatpush1.bf16.msra.mxu0 %v4102_v32  ;;  %v4176_v32 = vld [vmem:[%s5476_s5 + $0x214] ss:$8 sps:$4 sm:$0xff]  }
 0x380   : > { %1731 = vmatprep.subr.bf16.mxu0 %v4107_v33  ;;  %v4179_v33 = vld [vmem:[%s5476_s5 + $0x224] ss:$8 sps:$4 sm:$0xff]  }
 0x383   : > { %1732 = vmatpush1.bf16.msra.mxu0 %v4105_v34  ;;  %v4177_v34 = vld [vmem:[%s5476_s5 + $0x220] ss:$8 sps:$4 sm:$0xff]  }
 0x384   : > { %1733 = vmatprep.subr.bf16.mxu0 %v4110_v35  ;;  %v4182_v35 = vld [vmem:[%s5476_s5 + $0x234] ss:$8 sps:$4 sm:$0xff]  }
 0x387   : > { %1734 = vmatpush1.bf16.msra.mxu0 %v4108_v36  ;;  %v4180_v36 = vld [vmem:[%s5476_s5 + $0x230] ss:$8 sps:$4 sm:$0xff]  }
 0x388   : > { %1735 = vmatprep.subr.bf16.mxu0 %v4113_v37  ;;  %v4185_v37 = vld [vmem:[%s5476_s5 + $0x244] ss:$8 sps:$4 sm:$0xff]  }
 0x38b   : > { %1736 = vmatpush1.bf16.msra.mxu0 %v4111_v38  ;;  %v3437_v38 = vld [vmem:[%s5476_s5 + $0x250] sm:$0xff] }
 0x38c   : > { %1737 = vmatprep.subr.bf16.mxu0 %v4116_v39  ;;  %v4183_v39 = vld [vmem:[%s5476_s5 + $0x240] ss:$8 sps:$4 sm:$0xff]   ;;  %v3453_v40 = vcombine.high %v3437_v38, %v3437_v38 }
 0x38f   : > { %1738 = vmatpush1.bf16.msra.mxu0 %v4114_v41  ;;  %v3452_v41 = vcombine.low %v3437_v38, %v3437_v38 }
 0x390   : > { %3355 = vmatprep.subr.msk.bf16.mxu0 %vm1593_vm4, %v3354_v42 }
 0x391   : > { %v2153_v42 = vsel %vm1593_vm4, %v3452_v41, 0 }
 0x393   : > { %1740 = vmatpush1.bf16.msra.mxu0 %v1720_v44  ;;  %v2057_v44 = vpack.c.bf16 %v2056_v43, %v2056_v43  ;;  %v3475_v43 = vld [vmem:[%s5478_s7 + $0x128] sm:$0xff] }
 0x394   : > { %1868 = vmatprep.subr.bf16.mxu0 %v4121_v45  ;;  %v2277_v45 = vld [vmem:[%s5478_s7] sm:$0xff] }
 0x396   : > { %3356 = vmatmul.mubr.msk.bf16.vlgmr.msra.gmra.mrb[16].mxu0 %vm1476_vm5, %v1481_v48 }
 0x397   : > { %1869 = vmatpush1.bf16.msra.mxu0 %v4119_v47  ;;  %1900 = vmatprep.mubr.bf16.mxu0 %v4280_v2 }
 0x398   : > { %1870 = vmatprep.subr.bf16.mxu0 %v4124_v49  ;;  %v2201_v49 = vld [vmem:[%s5477_s6] sm:$0xf] }
 0x39b   : > { %1871 = vmatpush1.bf16.msra.mxu0 %v4122_v50  ;;  %v5095_v50 = vpack.c.bf16 %v2278_v46, %v2277_v45  ;;  %v3476_v45 = vld [vmem:[%s5478_s7 + $0x130] sm:$0xff]  ;;  %v3477_v46 = vld [vmem:[%s5478_s7 + $0x138] sm:$0xff] }
 0x39c   : > { %1872 = vmatprep.subr.bf16.mxu0 %v4127_v52 }
 0x39f   : > { %1873 = vmatpush1.bf16.msra.mxu0 %v4125_v53  ;;  %v2279_v53 = vld [vmem:[%s5478_s7 + $0x10] sm:$0xff] }
 0x3a0   : > { %1874 = vmatprep.subr.bf16.mxu0 %v4130_v54  ;;  %v2280_v54 = vld [vmem:[%s5478_s7 + $0x18] sm:$0xff] }
 0x3a3   : > { %1875 = vmatpush1.bf16.msra.mxu0 %v4128_v55 }
 0x3a4   : > { %1876 = vmatprep.subr.bf16.mxu0 %v4133_v56  ;;  %v5108_v56 = vpack.c.bf16 %v2280_v54, %v2279_v53  ;;  %v3479_v54 = vld [vmem:[%s5477_s6 + $0x4] sm:$0xf] }
 0x3a7   : > { %1877 = vmatpush1.bf16.msra.mxu0 %v4131_v57  ;;  %v2281_v57 = vld [vmem:[%s5478_s7 + $0x20] sm:$0xff] }
 0x3a8   : > { %1878 = vmatprep.subr.bf16.mxu0 %v4136_v58  ;;  %v2282_v58 = vld [vmem:[%s5478_s7 + $0x28] sm:$0xff] }
 0x3ab   : > { %1879 = vmatpush1.bf16.msra.mxu0 %v4134_v59  ;;  %v5118_v59 = vpack.c.bf16 %v2282_v58, %v2281_v57  ;;  %v4188_v58 = vld [vmem:[%s5480_s9 + $0x28] sm:$0xff]  }
 0x3ac   : > { %1880 = vmatprep.subr.bf16.mxu0 %v4139_v60  ;;  %v2283_v60 = vld [vmem:[%s5478_s7 + $0x30] sm:$0xff] }
 0x3af   : > { %1881 = vmatpush1.bf16.msra.mxu0 %v4137_v62  ;;  %v5128_v62 = vpack.c.bf16 %v2284_v61, %v2283_v60  ;;  %v4190_v60 = vld [vmem:[%s5480_s9 + $0x30] sm:$0xff]   ;;  %v4191_v61 = vld [vmem:[%s5480_s9 + $0x58] sm:$0xff]  }
 0x3b0   : > { %3388 = vmatprep.subr.msk.bf16.mxu0 %vm1593_vm4, %v3387_v63  ;;  %v2285_v63 = vld [vmem:[%s5478_s7 + $0x40] sm:$0xff] }
 0x3b3   : > { %1883 = vmatpush1.bf16.msra.mxu0 %v1863_v1  ;;  %v5138_v1 = vpack.c.bf16 %v2286_v0, %v2285_v63  ;;  %v4193_v63 = vld [vmem:[%s5480_s9 + $0x60] sm:$0xff]  }
 0x3b4   : > { %2013 = vmatprep.subr.bf16.mxu0 %v4144_v3  ;;  %v2287_v3 = vld [vmem:[%s5478_s7 + $0x50] sm:$0xff]  ;;  %v4194_v0 = vld [vmem:[%s5480_s9 + $0x40] sm:$0xff]  }
 0x3b6   : > { %3389 = vmatmul.mubr.msk.bf16.vlgmr.msra.gmra.mrb[16].mxu0 %vm1476_vm5, %v1767_v6  ;;  %v2289_v6 = vld [vmem:[%s5478_s7 + $0x60] sm:$0xff] }
 0x3b7   : > { %2014 = vmatpush1.bf16.msra.mxu0 %v4142_v5  ;;  %2045 = vmatprep.mubr.bf16.mxu0 %v4280_v2  ;;  %v5148_v5 = vpack.c.bf16 %v2288_v4, %v2287_v3  ;;  %v4196_v3 = vld [vmem:[%s5480_s9 + $0x48] sm:$0xff]   ;;  %v4197_v4 = vld [vmem:[%s5480_s9 + $0x70] sm:$0xff]  }
 0x3b8   : > { %2015 = vmatprep.subr.bf16.mxu0 %v4147_v7  ;;  %v2290_v7 = vld [vmem:[%s5478_s7 + $0x68] sm:$0xff] }
 0x3bb   : > { %2016 = vmatpush1.bf16.msra.mxu0 %v4145_v9  ;;  %v5158_v9 = vpack.c.bf16 %v2290_v7, %v2289_v6 }
 0x3bc   : > { %2017 = vmatprep.subr.bf16.mxu0 %v4150_v10  ;;  %v2291_v10 = vld [vmem:[%s5478_s7 + $0x70] sm:$0xff] }
 0x3bf   : > { %2018 = vmatpush1.bf16.msra.mxu0 %v4148_v11  ;;  %v2292_v11 = vld [vmem:[%s5478_s7 + $0x78] sm:$0xff] }
 0x3c0   : > { %2019 = vmatprep.subr.bf16.mxu0 %v4153_v12  ;;  %v5168_v12 = vpack.c.bf16 %v2292_v11, %v2291_v10  ;;  %v3483_v11 = vld [vmem:[%s5479_s8] ss:$0 sm:$0xff] }
 0x3c3   : > { %2020 = vmatpush1.bf16.msra.mxu0 %v4151_v13  ;;  %v2293_v13 = vld [vmem:[%s5478_s7 + $0x80] sm:$0xff] }
 0x3c4   : > { %2021 = vmatprep.subr.bf16.mxu0 %v4156_v14  ;;  %v2294_v14 = vld [vmem:[%s5478_s7 + $0x88] sm:$0xff] }
 0x3c7   : > { %2022 = vmatpush1.bf16.msra.mxu0 %v4154_v15  ;;  %v5178_v15 = vpack.c.bf16 %v2294_v14, %v2293_v13 }
 0x3c8   : > { %2023 = vmatprep.subr.bf16.mxu0 %v4159_v16  ;;  %v2295_v16 = vld [vmem:[%s5478_s7 + $0x90] sm:$0xff] }
 0x3cb   : > { %2024 = vmatpush1.bf16.msra.mxu0 %v4157_v17  ;;  %v2296_v17 = vld [vmem:[%s5478_s7 + $0x98] sm:$0xff] }
 0x3cc   : > { %2025 = vmatprep.subr.bf16.mxu0 %v4162_v18  ;;  %v5188_v18 = vpack.c.bf16 %v2296_v17, %v2295_v16  ;;  %v4198_v16 = vld [vmem:[%s5480_s9] sm:$0xff]  }
 0x3cf   : > { %2026 = vmatpush1.bf16.msra.mxu0 %v4160_v20  ;;  %v3459_v20 = vld [vmem:[%s5478_s7 + $0xa8] sm:$0xff] }
 0x3d0   : > { %3421 = vmatprep.subr.msk.bf16.mxu0 %vm1593_vm4, %v3420_v21  ;;  %v3863_v21 = vpack.c.bf16 %v3459_v20, %v3458_v19  ;;  %v4199_v20 = vld [vmem:[%s5480_s9 + $0x8] sm:$0xff]  }
 0x3d3   : > { %2028 = vmatpush1.bf16.msra.mxu0 %v2008_v23  ;;  %v3461_v23 = vld [vmem:[%s5478_s7 + $0xb8] sm:$0xff] }
 0x3d4   : > { %2158 = vmatprep.subr.bf16.mxu0 %v4167_v24  ;;  %v3866_v24 = vpack.c.bf16 %v3461_v23, %v3460_v22  ;;  %v4201_v22 = vld [vmem:[%s5480_s9 + $0x18] sm:$0xff]   ;;  %v4202_v23 = vld [vmem:[%s5480_s9 + $0x20] sm:$0xff]  }
 0x3d6   : > { %3422 = vmatmul.mubr.msk.bf16.vlgmr.msra.gmra.mrb[16].mxu0 %vm1476_vm5, %v1912_v27 }
 0x3d7   : > { %2159 = vmatpush1.bf16.msra.mxu0 %v4165_v26  ;;  %2190 = vmatprep.mubr.bf16.mxu0 %v4280_v2  ;;  %v4174_v2 = vld [vmem:[%s5476_s5 + $0x210] ss:$8 sps:$4 sm:$0xff]   ;;  %v3463_v26 = vld [vmem:[%s5478_s7 + $0xc8] sm:$0xff] }
 0x3d8   : > { %2160 = vmatprep.subr.bf16.mxu0 %v4170_v28  ;;  %v3869_v27 = vpack.c.bf16 %v3463_v26, %v3462_v25  ;;  %v3464_v28 = vld [vmem:[%s5478_s7 + $0xd0] sm:$0xff]  ;;  %v4203_v25 = vld [vmem:[%s5480_s9 + $0x78] sm:$0xff]  }
 0x3db   : > { %2161 = vmatpush1.bf16.msra.mxu0 %v4168_v29  ;;  %v3465_v29 = vld [vmem:[%s5478_s7 + $0xd8] sm:$0xff] }
 0x3dc   : > { %2162 = vmatprep.subr.bf16.mxu0 %v4173_v30  ;;  %v3872_v30 = vpack.c.bf16 %v3465_v29, %v3464_v28  ;;  %v4205_v28 = vld [vmem:[%s5480_s9 + $0x88] sm:$0xff]   ;;  %v4206_v29 = vld [vmem:[%s5480_s9 + $0x90] sm:$0xff]  }
 0x3df   : > { %2163 = vmatpush1.bf16.msra.mxu0 %v4171_v31  ;;  %v3466_v31 = vld [vmem:[%s5478_s7 + $0xe0] sm:$0xff] }
 0x3e0   : > { %2164 = vmatprep.subr.bf16.mxu0 %v4176_v32  ;;  %v3467_v32 = vld [vmem:[%s5478_s7 + $0xe8] sm:$0xff] }
 0x3e3   : > { %2165 = vmatpush1.bf16.msra.mxu0 %v4174_v2  ;;  %v3875_v2 = vpack.c.bf16 %v3467_v32, %v3466_v31 }
 0x3e4   : > { %2166 = vmatprep.subr.bf16.mxu0 %v4179_v33  ;;  %v3468_v33 = vld [vmem:[%s5478_s7 + $0xf0] sm:$0xff] }
 0x3e7   : > { %2167 = vmatpush1.bf16.msra.mxu0 %v4177_v34  ;;  %v3469_v34 = vld [vmem:[%s5478_s7 + $0xf8] sm:$0xff] }
 0x3e8   : > { %2168 = vmatprep.subr.bf16.mxu0 %v4182_v35  ;;  %v3878_v35 = vpack.c.bf16 %v3469_v34, %v3468_v33  ;;  %v4209_v33 = vld [vmem:[%s5482_s11 + $0x8] sm:$0xff]   ;;  %v4210_v34 = vld [vmem:[%s5482_s11 + $0x10] sm:$0xff]  }
 0x3eb   : > { %2169 = vmatpush1.bf16.msra.mxu0 %v4180_v36  ;;  %v3470_v36 = vld [vmem:[%s5478_s7 + $0x100] sm:$0xff] }
 0x3ec   : > { %2170 = vmatprep.subr.bf16.mxu0 %v4185_v37  ;;  %v3471_v37 = vld [vmem:[%s5478_s7 + $0x108] sm:$0xff] }
 0x3ed   : > { %v3881_v38 = vpack.c.bf16 %v3471_v37, %v3470_v36 }
 0x3ef   : > { %2171 = vmatpush1.bf16.msra.mxu0 %v4183_v39  ;;  %v3472_v39 = vld [vmem:[%s5478_s7 + $0x110] sm:$0xff] }
 0x3f0   : > { %3454 = vmatprep.subr.msk.bf16.mxu0 %vm1593_vm4, %v3453_v40  ;;  %v3473_v40 = vld [vmem:[%s5478_s7 + $0x118] sm:$0xff] }
 0x3f1   : > { %v3884_v41 = vpack.c.bf16 %v3473_v40, %v3472_v39 }
 0x3f3   : > { %2173 = vmatpush1.bf16.msra.mxu0 %v2153_v42  ;;  %v3474_v42 = vld [vmem:[%s5478_s7 + $0x120] sm:$0xff] }
 0x3f4   : > { %3922 = vmatprep.subr.bf16.mxu0 %v4282_v8 }
 0x3f6   : > { %3455 = vmatmul.mubr.msk.bf16.vlgmr.msra.gmra.mrb[16].mxu0 %vm1476_vm5, %v2057_v44  ;;  %v3887_v44 = vpack.c.bf16 %v3475_v43, %v3474_v42 }
 0x3f7   : > { %3924 = vmatpush1.bf16.msra.mxu0 %v3863_v21 }
 0x3f8   : > { %3925 = vmatprep.subr.bf16.mxu0 %v4282_v8 }
 0x3fb   : > { %3927 = vmatpush1.bf16.msra.mxu0 %v3866_v24 }
 0x3fc   : > { %3928 = vmatprep.subr.bf16.mxu0 %v4282_v8 }
 0x3ff   : > { %3930 = vmatpush1.bf16.msra.mxu0 %v3869_v27 }
 0x400   : > { %3931 = vmatprep.subr.bf16.mxu0 %v4282_v8 }
 0x403   : > { %3933 = vmatpush1.bf16.msra.mxu0 %v3872_v30 }
 0x404   : > { %3934 = vmatprep.subr.bf16.mxu0 %v4282_v8 }
 0x407   : > { %3936 = vmatpush1.bf16.msra.mxu0 %v3875_v2 }
 0x408   : > { %3937 = vmatprep.subr.bf16.mxu0 %v4282_v8 }
 0x40b   : > { %3939 = vmatpush1.bf16.msra.mxu0 %v3878_v35 }
 0x40c   : > { %3940 = vmatprep.subr.bf16.mxu0 %v4282_v8 }
 0x40f   : > { %3942 = vmatpush1.bf16.msra.mxu0 %v3881_v38 }
 0x410   : > { %3943 = vmatprep.subr.bf16.mxu0 %v4282_v8 }
 0x413   : > { %3945 = vmatpush1.bf16.msra.mxu0 %v3884_v41 }
 0x414   : > { %3946 = vmatprep.subr.bf16.mxu0 %v4282_v8 }
 0x417   : > { %3948 = vmatpush1.bf16.msra.mxu0 %v3887_v44 }
 0x418   : > { %3949 = vmatprep.subr.bf16.mxu0 %v4282_v8 }
 0x4c9   : > { %v5088_v47 = vpop.f32.mrb[16].mxu0 }
 0x4ca   : > { %v5090_v48 = vpop.f32.mrb[17].mxu0 }
 0x4cb   : > { %v2196_v52 = vpop.f32.mrb[18].mxu0  ;;  %2206 = vmatprep.subr.mxu1 %v5090_v48 }
 0x4cc   : > { %v2197_v55 = vpop.f32.mrb[19].mxu0  ;;  %2207 = vmatpush1.msra.mxu1 %v5088_v47 }
 0x4cd   : > { %3456 = vmatmul.mubr.msk.f32.vlgmr.msra.gmra.mrb[16].mxu1 %vm2202_vm7, %v2201_v49  ;;  %3832 = vmatprep.subr.bf16.mxu1 %v4282_v8  ;;  %v3890_v49 = vpack.c.bf16 %v3477_v46, %v3476_v45 }
 0x4ce   : > { %3834 = vmatpush1.bf16.msra.mxu1 %v5095_v50 }
 0x4cf   : > { %3835 = vmatprep.subr.bf16.mxu1 %v4282_v8  ;;  %3951 = vmatpush1.bf16.msra.mxu0 %v3890_v49 }
 0x4d0   : > { %3604 = vmatprep.subr.bf16.mxu0 %v4281_v51 }
 0x4d2   : > { %3837 = vmatpush1.bf16.msra.mxu1 %v5108_v56 }
 0x4d3   : > { %3838 = vmatprep.subr.bf16.mxu1 %v4282_v8 }
 0x4d6   : > { %3840 = vmatpush1.bf16.msra.mxu1 %v5118_v59 }
 0x4d7   : > { %3841 = vmatprep.subr.bf16.mxu1 %v4282_v8 }
 0x4da   : > { %3843 = vmatpush1.bf16.msra.mxu1 %v5128_v62 }
 0x4db   : > { %3844 = vmatprep.subr.bf16.mxu1 %v4282_v8 }
 0x4de   : > { %3846 = vmatpush1.bf16.msra.mxu1 %v5138_v1 }
 0x4df   : > { %3847 = vmatprep.subr.bf16.mxu1 %v4282_v8 }
 0x4e2   : > { %3849 = vmatpush1.bf16.msra.mxu1 %v5148_v5 }
 0x4e3   : > { %3850 = vmatprep.subr.bf16.mxu1 %v4282_v8 }
 0x4e6   : > { %3852 = vmatpush1.bf16.msra.mxu1 %v5158_v9 }
 0x4e7   : > { %3853 = vmatprep.subr.bf16.mxu1 %v4282_v8 }
 0x4ea   : > { %3855 = vmatpush1.bf16.msra.mxu1 %v5168_v12 }
 0x4eb   : > { %3856 = vmatprep.subr.bf16.mxu1 %v4282_v8 }
 0x4ee   : > { %3858 = vmatpush1.bf16.msra.mxu1 %v5178_v15 }
 0x4ef   : > { %3859 = vmatprep.subr.bf16.mxu1 %v4282_v8 }
 0x4f2   : > { %3861 = vmatpush1.bf16.msra.mxu1 %v5188_v18 }
 0x4f3   : > { %3862 = vmatprep.subr.bf16.mxu1 %v4282_v8 }
 0x5a0   : > { %v2272_v52 = vpop.f32.mrb[16].mxu1 }
 0x5a1   : > { %v2274_v53 = vpop.f32.mrb[17].mxu1 }
 0x5a2   : > { %3457 = vmatprep.mubr.msk.f32.mxu1 %vm2297_vm8, %v2274_v53 }
 0x5a3   : > { %2366 = vmatmul.mubr.f32.vlgmr.msra.gmra.mrb[18].mxu1 %v2272_v52 }
 0x5a4   : > { %3864 = vmatpush1.bf16.msra.mxu1 %v3863_v21  ;;  %3478 = vmatprep.mubr.msk.f32.mxu1 %vm2297_vm8, %v2274_v53  ;;  %v4200_v21 = vld [vmem:[%s5480_s9 + $0x10] sm:$0xff]  }
 0x5a5   : > { %3865 = vmatprep.subr.bf16.mxu1 %v4282_v8 }
 0x5a8   : > { %3867 = vmatpush1.bf16.msra.mxu1 %v3866_v24 }
 0x5a9   : > { %3868 = vmatprep.subr.bf16.mxu1 %v4282_v8 }
 0x5ac   : > { %3870 = vmatpush1.bf16.msra.mxu1 %v3869_v27  ;;  %v4204_v27 = vld [vmem:[%s5480_s9 + $0x80] sm:$0xff]  }
 0x5ad   : > { %3871 = vmatprep.subr.bf16.mxu1 %v4282_v8 }
 0x5b0   : > { %3873 = vmatpush1.bf16.msra.mxu1 %v3872_v30  ;;  %v4207_v30 = vld [vmem:[%s5480_s9 + $0x98] sm:$0xff]  }
 0x5b1   : > { %3874 = vmatprep.subr.bf16.mxu1 %v4282_v8 }
 0x5b4   : > { %3876 = vmatpush1.bf16.msra.mxu1 %v3875_v2  ;;  %v4208_v2 = vld [vmem:[%s5482_s11] sm:$0xff]  }
 0x5b5   : > { %3877 = vmatprep.subr.bf16.mxu1 %v4282_v8 }
 0x5b8   : > { %3879 = vmatpush1.bf16.msra.mxu1 %v3878_v35  ;;  %v4211_v35 = vld [vmem:[%s5482_s11 + $0x18] ss:$0 sps:$4 sm:$0x11]  }
 0x5b9   : > { %3880 = vmatprep.subr.bf16.mxu1 %v4282_v8  ;;  %v3080_v36 = vsel %vm3078_vm12, %v4211_v35, 0 }
 0x5bc   : > { %3882 = vmatpush1.bf16.msra.mxu1 %v3881_v38 }
 0x5bd   : > { %3883 = vmatprep.subr.bf16.mxu1 %v4282_v8 }
 0x5c0   : > { %3885 = vmatpush1.bf16.msra.mxu1 %v3884_v41 }
 0x5c1   : > { %3886 = vmatprep.subr.bf16.mxu1 %v4282_v8 }
 0x5c4   : > { %3888 = vmatpush1.bf16.msra.mxu1 %v3887_v44 }
 0x5c5   : > { %3889 = vmatprep.subr.bf16.mxu1 %v4282_v8 }
 0x5c8   : > { %3891 = vmatpush1.bf16.msra.mxu1 %v3890_v49 }
 0x5c9   : > { %2467 = vmatprep.subr.mxu1 %v5090_v48 }
 0x5cb   : > { %2457 = vmatmul.mubr.f32.vlgmr.msra.gmra.mrb[20].mxu1 %v2272_v52 }
 0x5cc   : > { %2468 = vmatpush1.msra.mxu1 %v5088_v47  ;;  %2531 = vmatprep.mubr.f32.mxu1 %v4281_v51 }
 0x5cd   : > { %3892 = vmatprep.subr.bf16.mxu1 %v4282_v8 }
 0x5cf   : > { %3480 = vmatmul.mubr.msk.f32.vlgmr.msra.gmra.mrb[22].mxu1 %vm2202_vm7, %v3479_v54 }
 0x5d0   : > { %3894 = vmatpush1.bf16.msra.mxu1 %v5095_v50 }
 0x5d1   : > { %3895 = vmatprep.subr.bf16.mxu1 %v4282_v8 }
 0x5d4   : > { %3897 = vmatpush1.bf16.msra.mxu1 %v5108_v56 }
 0x5d5   : > { %3898 = vmatprep.subr.bf16.mxu1 %v4282_v8 }
 0x5d8   : > { %3900 = vmatpush1.bf16.msra.mxu1 %v5118_v59 }
 0x5d9   : > { %3901 = vmatprep.subr.bf16.mxu1 %v4282_v8 }
 0x5dc   : > { %3903 = vmatpush1.bf16.msra.mxu1 %v5128_v62  ;;  %v4192_v62 = vld [vmem:[%s5480_s9 + $0x38] sm:$0xff]  }
 0x5dd   : > { %3904 = vmatprep.subr.bf16.mxu1 %v4282_v8 }
 0x5e0   : > { %3906 = vmatpush1.bf16.msra.mxu1 %v5138_v1  ;;  %v4195_v1 = vld [vmem:[%s5480_s9 + $0x68] sm:$0xff]  }
 0x5e1   : > { %3907 = vmatprep.subr.bf16.mxu1 %v4282_v8 }
 0x5e4   : > { %3909 = vmatpush1.bf16.msra.mxu1 %v5148_v5 }
 0x5e5   : > { %3910 = vmatprep.subr.bf16.mxu1 %v4282_v8 }
 0x5e8   : > { %3912 = vmatpush1.bf16.msra.mxu1 %v5158_v9 }
 0x5e9   : > { %3913 = vmatprep.subr.bf16.mxu1 %v4282_v8 }
 0x5ec   : > { %3915 = vmatpush1.bf16.msra.mxu1 %v5168_v12 }
 0x5ed   : > { %3916 = vmatprep.subr.bf16.mxu1 %v4282_v8 }
 0x5f0   : > { %3918 = vmatpush1.bf16.msra.mxu1 %v5178_v15 }
 0x5f1   : > { %3919 = vmatprep.subr.bf16.mxu1 %v4282_v8  ;;  %v4189_v8 = vld [vmem:[%s5480_s9 + $0x50] sm:$0xff]  }
 0x5f4   : > { %3921 = vmatpush1.bf16.msra.mxu1 %v5188_v18 }
 0x5f5   : > { %3576 = vmatprep.subr.bf16.mxu1 %v4281_v51 }
 0x676   : > { %v2367_v47 = vpop.f32.mrb[18].mxu1 }
 0x677   : > { %v2369_v48 = vpop.f32.mrb[19].mxu1 }
 0x69e   : > { %v2458_v50 = vpop.f32.mrb[20].mxu1 }
 0x69f   : > { %v2681_v55 = vmax.f32 %v2367_v47, %v2458_v50  ;;  %v2460_v56 = vpop.f32.mrb[21].mxu1  ;;  %v3041_v47 = vld [vmem:[%s5481_s10] sm:$0x1] }
 0x6a2   : > { %v2533_v57 = vpop.f32.mrb[22].mxu1 }
 0x6a3   : > { %v2535_v59 = vpop.f32.mrb[23].mxu1 }
 0x6a4   : > { %3481 = vmatprep.mubr.msk.f32.mxu1 %vm2297_vm8, %v2535_v59  ;;  %3482 = vmatprep.mubr.msk.f32.mxu0 %vm2297_vm8, %v2535_v59 }
 0x6a5   : > { %2606 = vmatmul.mubr.f32.vlgmr.msra.gmra.mrb[24].mxu1 %v2533_v57  ;;  %2676 = vmatmul.mubr.f32.vlgmr.msra.gmra.mrb[20].mxu0 %v2533_v57 }
 0x6a6   : > { %3577 = vmatpush3.bf16.msra.mxu1 %v4188_v58  ;;  %3605 = vmatpush3.bf16.msra.mxu0 %v4189_v8  ;;  %v3052_v8 = vld [vmem:[%s5483_s12] sm:$0x1] }
 0x6a7   : > { %3578 = vmatprep.subr.bf16.mxu1 %v4281_v51  ;;  %3606 = vmatprep.subr.bf16.mxu0 %v4281_v51 }
 0x6a8   : > { %3586 = vmatprep.mubr.msk.bf16.mxu1 %vm4283_vm9, %v4281_v51  ;;  %3614 = vmatprep.mubr.msk.bf16.mxu0 %vm4283_vm9, %v4281_v51 }
 0x6aa   : > { %3579 = vmatpush3.bf16.msra.mxu1 %v4190_v60  ;;  %3607 = vmatpush3.bf16.msra.mxu0 %v4191_v61 }
 0x6ab   : > { %3580 = vmatprep.subr.bf16.mxu1 %v4281_v51  ;;  %3608 = vmatprep.subr.bf16.mxu0 %v4281_v51 }
 0x6ae   : > { %3581 = vmatpush3.bf16.msra.mxu1 %v4192_v62  ;;  %3609 = vmatpush3.bf16.msra.mxu0 %v4193_v63 }
 0x6af   : > { %3582 = vmatprep.subr.bf16.mxu1 %v4281_v51  ;;  %3610 = vmatprep.subr.bf16.mxu0 %v4281_v51 }
 0x6b2   : > { %3583 = vmatpush3.bf16.msra.mxu1 %v4194_v0  ;;  %3611 = vmatpush3.bf16.msra.mxu0 %v4195_v1 }
 0x6b3   : > { %3584 = vmatprep.subr.bf16.mxu1 %v4281_v51  ;;  %3612 = vmatprep.subr.bf16.mxu0 %v4281_v51 }
 0x6b6   : > { %3585 = vmatpush3.bf16.msra.mxu1 %v4196_v3  ;;  %3613 = vmatpush3.bf16.msra.mxu0 %v4197_v4 }
 0x6b7   : > { %3590 = vmatprep.subr.bf16.mxu1 %v4281_v51  ;;  %3632 = vmatprep.subr.bf16.mxu0 %v4281_v51 }
 0x778   : > { %v2607_v5 = vpop.f32.mrb[24].mxu1  ;;  %v2677_v6 = vpop.f32.mrb[20].mxu0 }
 0x779   : > { %v2682_v7 = vmax.f32 %v2607_v5, %v2677_v6  ;;  %v2609_v9 = vpop.f32.mrb[25].mxu1  ;;  %v2679_v10 = vpop.f32.mrb[21].mxu0 }
 0x77b   : > { %v2683_v12 = vmax.f32 %v2681_v55, %v2682_v7 }
 0x77d   : > { %v2691_v13 = vadd.f32 %v3483_v11, %v2683_v12 }
 0x77f   : > { %v2692_v14 = vmax.f32 %v2691_v13, 0.0 }
 0x781   : > { %2694 = vst.msk [vmem:[#allocation3] sm:$0xf] %vm2693_vm10, %v2692_v14 }
 0x788   : > { %v2707_v15 = vld [vmem:[#allocation3 + $0x1] sm:$0x1]  ;;  %v2867_v17 = vld [vmem:[#allocation3 + $0x2] sm:$0x1]  ;;  %v2695_v24 = vld [vmem:[#allocation3] sm:$0x1] }
 0x789   : > { %v2708_v18 = vpack.c.bf16 %v2707_v15, %v2707_v15  ;;  %v2868_v19 = vpack.c.bf16 %v2867_v17, %v2867_v17  ;;  %v2696_v26 = vpack.c.bf16 %v2695_v24, %v2695_v24  ;;  %v2954_v31 = vld [vmem:[#allocation3 + $0x3] sm:$0x1] }
 0x78a   : > { %v2955_v32 = vpack.c.bf16 %v2954_v31, %v2954_v31 }
 0x78b   : > { %3587 = vmatmul.mubr.msk.bf16.vlgmr.msra.gmra.mrb[28].mxu1 %vm2750_vm11, %v2708_v18  ;;  %3615 = vmatmul.mubr.msk.bf16.vlgmr.msra.gmra.mrb[24].mxu0 %vm2750_vm11, %v2868_v19 }
 0x78c   : > { %3591 = vmatpush3.bf16.msra.mxu1 %v4198_v16  ;;  %3600 = vmatprep.mubr.msk.bf16.mxu1 %vm4283_vm9, %v4281_v51 }
 0x78d   : > { %3592 = vmatprep.subr.bf16.mxu1 %v4281_v51  ;;  %3640 = vmatprep.mubr.msk.bf16.mxu0 %vm4283_vm9, %v4281_v51 }
 0x78e   : > { %3633 = vmatpush3.bf16.msra.mxu0 %v4208_v2 }
 0x78f   : > { %3634 = vmatprep.subr.bf16.mxu0 %v4281_v51 }
 0x790   : > { %3593 = vmatpush3.bf16.msra.mxu1 %v4199_v20 }
 0x791   : > { %3594 = vmatprep.subr.bf16.mxu1 %v4281_v51 }
 0x792   : > { %3635 = vmatpush3.bf16.msra.mxu0 %v4209_v33 }
 0x793   : > { %3636 = vmatprep.subr.bf16.mxu0 %v4281_v51 }
 0x794   : > { %3595 = vmatpush3.bf16.msra.mxu1 %v4200_v21 }
 0x795   : > { %3596 = vmatprep.subr.bf16.mxu1 %v4281_v51 }
 0x796   : > { %3637 = vmatpush3.bf16.msra.mxu0 %v4210_v34 }
 0x797   : > { %3638 = vmatprep.subr.bf16.mxu0 %v4281_v51 }
 0x798   : > { %3597 = vmatpush3.bf16.msra.mxu1 %v4201_v22 }
 0x799   : > { %3598 = vmatprep.subr.bf16.mxu1 %v4281_v51 }
 0x79a   : > { %3639 = vmatpush3.bf16.msra.mxu0 %v3080_v36 }
 0x79c   : > { %3599 = vmatpush3.bf16.msra.mxu1 %v4202_v23 }
 0x79d   : > { %3618 = vmatprep.subr.bf16.mxu1 %v4281_v51 }
 0x79f   : > { %3601 = vmatmul.mubr.msk.bf16.vlgmr.msra.gmra.mrb[32].mxu1 %vm2750_vm11, %v2696_v26 }
 0x7a0   : > { %3619 = vmatpush3.bf16.msra.mxu1 %v4203_v25  ;;  %3628 = vmatprep.mubr.msk.bf16.mxu1 %vm4283_vm9, %v4281_v51 }
 0x7a1   : > { %3620 = vmatprep.subr.bf16.mxu1 %v4281_v51 }
 0x7a4   : > { %3621 = vmatpush3.bf16.msra.mxu1 %v4204_v27 }
 0x7a5   : > { %3622 = vmatprep.subr.bf16.mxu1 %v4281_v51 }
 0x7a8   : > { %3623 = vmatpush3.bf16.msra.mxu1 %v4205_v28 }
 0x7a9   : > { %3624 = vmatprep.subr.bf16.mxu1 %v4281_v51 }
 0x7ac   : > { %3625 = vmatpush3.bf16.msra.mxu1 %v4206_v29 }
 0x7ad   : > { %3626 = vmatprep.subr.bf16.mxu1 %v4281_v51 }
 0x7b0   : > { %3627 = vmatpush3.bf16.msra.mxu1 %v4207_v30 }
 0x7b3   : > { %3629 = vmatmul.mubr.msk.bf16.vlgmr.msra.gmra.mrb[36].mxu1 %vm2750_vm11, %v2955_v32 }
 0x85e   : > { %v2788_v37 = vpop.f32.mrb[28].mxu1  ;;  %v2947_v38 = vpop.f32.mrb[24].mxu0 }
 0x85f   : > { %v3588_v39 = vpop.f32.mrb[29].mxu1  ;;  %v3616_v40 = vpop.f32.mrb[25].mxu0 }
 0x860   : > { %v2791_v41 = vpop.f32.mrb[30].mxu1  ;;  %v2950_v42 = vpop.f32.mrb[26].mxu0 }
 0x861   : > { %v3589_v43 = vpop.f32.mrb[31].mxu1  ;;  %v3617_v44 = vpop.f32.mrb[27].mxu0 }
 0x872   : > { %v2861_v45 = vpop.f32.mrb[32].mxu1 }
 0x873   : > { %v2862_v46 = vadd.f32 %v2861_v45, %v2788_v37  ;;  %v3602_v49 = vpop.f32.mrb[33].mxu1 }
 0x874   : > { %v2864_v52 = vpop.f32.mrb[34].mxu1 }
 0x875   : > { %v3603_v51 = vpop.f32.mrb[35].mxu1  ;;  %v2953_v53 = vadd.f32 %v2947_v38, %v2862_v46 }
 0x886   : > { %v3034_v54 = vpop.f32.mrb[36].mxu1 }
 0x887   : > { %v3040_v48 = vadd.f32 %v3034_v54, %v2953_v53  ;;  %v3630_v50 = vpop.f32.mrb[37].mxu1 }
 0x888   : > { %v3037_v55 = vpop.f32.mrb[38].mxu1 }
 0x889   : > { %v3042_v56 = vadd.f32 %v3041_v47, %v3040_v48  ;;  %v3631_v57 = vpop.f32.mrb[39].mxu1 }
 0x88b   : > { %v3043_v58 = vmax.f32 %v3042_v56, 0.0 }
 0x88d   : > { %v3044_v59 = vpack.c.bf16 %v3043_v58, %v3043_v58 }
 0x88f   : > { %3641 = vmatmul.mubr.msk.bf16.vlgmr.msra.gmra.mrb[28].mxu0 %vm3074_vm13, %v3044_v59 }
 0x962   : > { %v3116_v60 = vpop.f32.mrb[28].mxu0 }
 0x963   : > { %v3117_v61 = vadd.f32 %v3116_v60, %v3052_v8  ;;  %v3642_v62 = vpop.f32.mrb[29].mxu0 }
 0x964   : > { %v3119_v63 = vpop.f32.mrb[30].mxu0 }
 0x965   : > { %v3643_v0 = vpop.f32.mrb[31].mxu0  ;;  %v3123_v1 = vsel %vm3122_vm14, %v3117_v61, -inf }
 0x966   : > { %3124 = vmax.xlane.f32.xlu0 %v3123_v1 }
 0x9f3   : > { %v3125_v3 = vpop.xlane.xlu0 %3124 }
 0x9f4   : > { %v3126_v4 = vsub.f32 %v3117_v61, %v3125_v3 }
 0x9f6   : > { %v3127_v5 = vmul.f32 1.442695, %v3126_v4 }
 0x9f8   : > { %4212 = vpow2.f32 %v3127_v5 }
 0xa02   : > { %v4213_v6 = vpop.eup %4212 }
 0xa03   : > { %v3129_v7 = vsel %vm3122_vm14, %v4213_v6, 0.0 }
 0xa04   : > { %3130 = vadd.xlane.f32.xlu0 %v3129_v7 }
 0xa91   : > { %v3131_v9 = vpop.xlane.xlu0 %3130 }
 0xa92   : > { %4214 = vlog2.f32 %v3131_v9 }
 0xa9c   : > { %v4215_v10 = vpop.eup %4214 }
 0xa9d   : > { %v3133_v11 = vmul.f32 0.6931472, %v4215_v10 }
 0xa9f   : > { %v3134_v12 = vsub.f32 %v3126_v4, %v3133_v11 }
 0xaa1   : > { %3135 = vst.msk [vmem:[%s432_s24] sm:$0x1] %vm3122_vm14, %v3134_v12 }
 0xaa2   : > { %4229 = shalt.err (!%p4226_p3)
}
 0xaa3   : > { %s4230_s15 = scalar_lea.hbm %s5428_s21, 16  ;;  %s4234_s27 = scalar_lea.hbm %s5484_s13, 32 }
 0xaa4   : > { %p4231_p4 = scmp.ne.s32.totalorder %s5428_s21, %s4230_s15  ;;  %p4235_p9 = scmp.lt.u32.totalorder %s5428_s21, %s5484_s13 }
 0xaa5   : > { %p4236_p10 = scmp.lt.u32.totalorder %s4234_s27, %s4230_s15  ;;  %p4238_p12 = scmp.lt.u32.totalorder %s4230_s15, %s5428_s21 }
 0xaa6   : > { %p4232_p7 = pnand %p4231_p4, %p4393_p5 }
 0xaa7   : > { %p4237_p11 = por %p4236_p10, %p4235_p9 }
 0xaa8   : > { %p4233_p8 = pneg %p4232_p7 }
 0xaa9   : > { %p4239_p13 = por %p4238_p12, %p4237_p11 }
 0xaab   : > { %p4240_p0 = pnand %p4239_p13, %p4233_p8 }
 0xaad   : > { %4243 = shalt.err (!%p4240_p0)
}
 0xaae   : > { %4000 = dma.vmem_to_hbm [thread:$0]  (%p4393_p5), %s5430_s20, 16, %s5428_s21, %s3137_s22  }
 0xaaf PF: > { %p4006_p1 = scmp.ge.s32.totalorder %s4278_s28, 2  ;;  %s3161_s0 = sand.u32 1, %s4266_s25  }
 0xab0   : > { %s3162_s23 = scalar_lea.sflag [#allocation5], %s3161_s0 }
 0xab1   : > { %p4003_p2 = pnand %p4006_p1, %p4397_p6 }
 0xab3   : > { %4261 = dma.done.wait (!%p4003_p2), %s3162_s23, 16  }
 0xab4   : > { %4263 = vsyncadd (!%p4003_p2), %s3162_s23, 4294967280  ;;  %s5492_s30 = sld [smem:[#allocation7_spill]]  ;;  %s5493_s27 = sld [smem:[#allocation8_spill]] }
 0xab5   : > { %p23_p3 = scmp.ge.s32.totalorder %s4380_s14, 4   ;;  %s5494_s25 = smov %s4270_s26 }
 0xab6   : > { %s5496_s28 = smov %s4380_s14 }
 0xab7   :  { %25 = sbr.rel (!%p23_p3) target bundleno = 5 (0x5), region = 122 }
 0xaba   : > { %s5495_s26 = smov %s5492_s30 }
 0xabe   :  { %3166 = vsyncpa [#allocation5], 1 }
 0xabf   :  { %3168 = vsyncpa [#allocation5 + $0x1], 1 }

</bundles_post_ra>
